<compile_context>
chip_gen: v7x
topology: tpu7x:2x2x1
jax: 0.10.0
libtpu: 0.0.40
codegen_flags: <defaults>
</compile_context>

<pallas_src>
import functools

import jax
import jax.numpy as jnp
from jax.experimental import pallas as pl
from jax.experimental.pallas import tpu as pltpu


# ---------------------------------------------------------------------------
# Pallas kernels
# ---------------------------------------------------------------------------
def _pw_conv_relu_kernel(x_ref, w_ref, b_ref, o_ref):
    # x: (TN, Cin) bf16, w: (Cin, Cout) bf16, b: (1, Cout) f32 -> relu(x@w + b)
    y = jnp.dot(x_ref[...], w_ref[...], preferred_element_type=jnp.float32)
    y = jnp.maximum(y + b_ref[...], 0.0)
    o_ref[...] = y.astype(o_ref.dtype)


def _pw_conv_relu_gap_kernel(x_ref, w_ref, b_ref, gap_ref, *, hw):
    # Fused 1x1 conv + ReLU + spatial-sum epilogue (for pure-leaf output blocks).
    # grid = (B, n_hw_tiles); x block: (1, THW, Cin); gap block: (1, 1, Cout).
    j = pl.program_id(1)

    @pl.when(j == 0)
    def _():
        gap_ref[...] = jnp.zeros_like(gap_ref)

    x = x_ref[0]                                        # (THW, Cin) bf16
    thw = x.shape[0]
    y = jnp.dot(x, w_ref[...], preferred_element_type=jnp.float32)
    y = jnp.maximum(y + b_ref[...], 0.0)                # (THW, Cout) f32
    if hw % thw != 0:                                   # mask ragged last tile
        row = jax.lax.broadcasted_iota(jnp.int32, (thw, 1), 0) + j * thw
        y = jnp.where(row < hw, y, 0.0)
    # spatial (row) reduction as a ones-matmul on the MXU instead of an XLU sum
    ones_row = jnp.ones((1, thw), jnp.float32)
    gap_ref[0] = gap_ref[0] + jnp.dot(ones_row, y,
                                      preferred_element_type=jnp.float32)


def _spatial_sum_kernel(x_ref, o_ref, *, hw):
    # Spatial sum for output blocks that are also consumed downstream.
    # grid = (B, n_hw_tiles); x block: (1, THW, C); o block: (1, 1, C).
    j = pl.program_id(1)

    @pl.when(j == 0)
    def _():
        o_ref[...] = jnp.zeros_like(o_ref)

    x = x_ref[0]                                        # (THW, C) bf16
    thw = x.shape[0]
    if hw % thw != 0:
        row = jax.lax.broadcasted_iota(jnp.int32, (thw, 1), 0) + j * thw
        x = jnp.where(row < hw, x, jnp.zeros_like(x))
    ones_row = jnp.ones((1, thw), x.dtype)
    o_ref[0] = o_ref[0] + jnp.dot(ones_row, x,
                                  preferred_element_type=jnp.float32)


def _combine_fc_kernel(gaps_ref, fcw_ref, fcb_ref, o_ref, *, inv_hw):
    # gaps: (K, B, Cmax) per-output spatial SUMS (tiny).
    # sum over outputs -> average by 1/(max_h*max_w) -> fully connected.
    pooled = jnp.sum(gaps_ref[...], axis=0) * inv_hw    # (B, Cmax)
    y = jnp.dot(pooled, fcw_ref[...], preferred_element_type=jnp.float32)
    o_ref[...] = (y + fcb_ref[...]).astype(o_ref.dtype)


# ---------------------------------------------------------------------------
# Wrappers
# ---------------------------------------------------------------------------
def pointwise_conv_relu(x_nhwc, w, b, row_tile=2048):
    """1x1 conv + ReLU.  x_nhwc: (B, H, W, Cin) bf16; w: (Cin, Cout) bf16."""
    B, H, W, Cin = x_nhwc.shape
    Cout = w.shape[1]
    N = B * H * W
    x2d = x_nhwc.reshape(N, Cin)                        # free reshape (NHWC)
    tn = N if N <= row_tile else row_tile               # row_tile % 8 == 0
    grid = (pl.cdiv(N, tn),)
    y2d = pl.pallas_call(
        _pw_conv_relu_kernel,
        out_shape=jax.ShapeDtypeStruct((N, Cout), jnp.bfloat16),
        grid=grid,
        in_specs=[
            pl.BlockSpec((tn, Cin), lambda i: (i, 0)),
            pl.BlockSpec((Cin, Cout), lambda i: (0, 0)),
            pl.BlockSpec((1, Cout), lambda i: (0, 0)),
        ],
        out_specs=pl.BlockSpec((tn, Cout), lambda i: (i, 0)),
        compiler_params=pltpu.CompilerParams(dimension_semantics=("parallel",)),
    )(x2d, w, b.reshape(1, Cout))
    return y2d.reshape(B, H, W, Cout)


def pointwise_conv_relu_gap(x_nhwc, w, b, hw_tile=2048):
    """Fused 1x1 conv + ReLU + spatial SUM; returns (B, Cout) f32 (no HxW writeback)."""
    B, H, W, Cin = x_nhwc.shape
    Cout = w.shape[1]
    HW = H * W
    x3d = x_nhwc.reshape(B, HW, Cin)
    thw = HW if HW <= hw_tile else hw_tile              # hw_tile % 8 == 0
    grid = (B, pl.cdiv(HW, thw))
    kernel = functools.partial(_pw_conv_relu_gap_kernel, hw=HW)
    gap = pl.pallas_call(
        kernel,
        out_shape=jax.ShapeDtypeStruct((B, 1, Cout), jnp.float32),
        grid=grid,
        in_specs=[
            pl.BlockSpec((1, thw, Cin), lambda bi, j: (bi, j, 0)),
            pl.BlockSpec((Cin, Cout), lambda bi, j: (0, 0)),
            pl.BlockSpec((1, Cout), lambda bi, j: (0, 0)),
        ],
        out_specs=pl.BlockSpec((1, 1, Cout), lambda bi, j: (bi, 0, 0)),
        compiler_params=pltpu.CompilerParams(
            dimension_semantics=("parallel", "arbitrary")),
    )(x3d, w, b.reshape(1, Cout))
    return gap.reshape(B, Cout)


def spatial_sum(y_nhwc, hw_tile=2048):
    """Spatial SUM over HxW of an NHWC tensor -> (B, C) f32."""
    B, H, W, C = y_nhwc.shape
    HW = H * W
    y3d = y_nhwc.reshape(B, HW, C)
    thw = HW if HW <= hw_tile else hw_tile
    grid = (B, pl.cdiv(HW, thw))
    kernel = functools.partial(_spatial_sum_kernel, hw=HW)
    s = pl.pallas_call(
        kernel,
        out_shape=jax.ShapeDtypeStruct((B, 1, C), jnp.float32),
        grid=grid,
        in_specs=[pl.BlockSpec((1, thw, C), lambda bi, j: (bi, j, 0))],
        out_specs=pl.BlockSpec((1, 1, C), lambda bi, j: (bi, 0, 0)),
        compiler_params=pltpu.CompilerParams(
            dimension_semantics=("parallel", "arbitrary")),
    )(y3d)
    return s.reshape(B, C)


def combine_fc(gap_sums_stacked, fc_w, fc_b, inv_hw):
    """sum over outputs -> scale (== AvgPool2d+Flatten) -> Linear.  All tiny."""
    K, B, C = gap_sums_stacked.shape
    F = fc_w.shape[0]
    kernel = functools.partial(_combine_fc_kernel, inv_hw=inv_hw)
    return pl.pallas_call(
        kernel,
        out_shape=jax.ShapeDtypeStruct((B, F), jnp.float32),
        grid=(1,),
        in_specs=[
            pl.BlockSpec((K, B, C), lambda i: (0, 0, 0)),
            pl.BlockSpec((C, F), lambda i: (0, 0)),
            pl.BlockSpec((1, F), lambda i: (0, 0)),
        ],
        out_specs=pl.BlockSpec((B, F), lambda i: (0, 0)),
    )(gap_sums_stacked, fc_w.T, fc_b.reshape(1, F))


# ---------------------------------------------------------------------------
# Individual (JAX / Pallas version of dagcnn_torch Individual)
# ---------------------------------------------------------------------------
class Block:
    """Synthetic DAG block: 1x1 conv + ReLU (Pallas MXU matmul kernel)."""
    # TODO(synk): multi-input blocks (concat/add variants) not implemented here.

    def __init__(self, input_indices, w, b):
        self.input_indices = list(input_indices)
        self.w = jnp.asarray(w, jnp.bfloat16)      # (Cin, Cout) MXU operand
        self.b = jnp.asarray(b, jnp.float32)       # (Cout,)
        self.out_channels = int(w.shape[1])

    def __call__(self, x_nhwc):
        return pointwise_conv_relu(x_nhwc, self.w, self.b)

    def forward_gap(self, x_nhwc):
        """Fused conv+ReLU+spatial-sum for pure-leaf output blocks."""
        B, H, W, _ = x_nhwc.shape
        gap = pointwise_conv_relu_gap(x_nhwc, self.w, self.b)
        return gap, (self.out_channels, H, W)


class Individual:
    def __init__(self, blocks, output_indices, fc_w, fc_b):
        self.blocks = blocks
        self.output_indices = list(output_indices)
        self.fc_w = jnp.asarray(fc_w, jnp.float32)   # (out_depth, in_depth)
        self.fc_b = jnp.asarray(fc_b, jnp.float32)   # (out_depth,)
        # Which block results are consumed by later blocks (need full tensors)?
        consumed = set()
        for blk in self.blocks:
            consumed.update(i for i in blk.input_indices if i >= 0)
        self._consumed = consumed
        # final_layer is nn.Identity() in the reference.
        # TODO(synk): plug other final_layer heads here if needed.
        self._jit_forward = jax.jit(self._forward)

    def _get_block_inputs(self, model_input, results, block):
        return [model_input if i == -1 else results[i] for i in block.input_indices]

    def _forward(self, model_input_nchw):
        # One NCHW -> NHWC transpose + bf16 cast at entry; channels-last after.
        x = jnp.transpose(model_input_nchw, (0, 2, 3, 1)).astype(jnp.bfloat16)
        out_set = set(self.output_indices)
        results = [None] * len(self.blocks)
        gap_sums, out_shapes = {}, {}
        for idx, block in enumerate(self.blocks):
            inputs = self._get_block_inputs(x, results, block)
            if idx in out_set and idx not in self._consumed:
                # Pure-leaf output: never materialize the full activation.
                gap_sums[idx], out_shapes[idx] = block.forward_gap(*inputs)
            else:
                y = block(*inputs)
                results[idx] = y
                if idx in out_set:
                    gap_sums[idx] = spatial_sum(y)
                    out_shapes[idx] = (y.shape[3], y.shape[1], y.shape[2])
        # match_shapes semantics applied at the pooled level: zero-padded
        # spatial/channel entries contribute nothing to the sums.
        max_c = max(out_shapes[i][0] for i in self.output_indices)
        max_h = max(out_shapes[i][1] for i in self.output_indices)
        max_w = max(out_shapes[i][2] for i in self.output_indices)
        gaps = []
        for i in self.output_indices:
            g = gap_sums[i]
            if g.shape[1] < max_c:
                g = jnp.pad(g, ((0, 0), (0, max_c - g.shape[1])))
            gaps.append(g)
        gaps = jnp.stack(gaps, axis=0)               # (K, B, max_c) -- tiny
        return combine_fc(gaps, self.fc_w, self.fc_b, 1.0 / float(max_h * max_w))

    def forward(self, model_input_nchw):
        return self._jit_forward(model_input_nchw)

    __call__ = forward


# ---------------------------------------------------------------------------
# Deterministic construction + smoke test
# ---------------------------------------------------------------------------
def _kaiming_normal(key, shape, fan_in):
    return jax.random.normal(key, shape, dtype=jnp.float32) * jnp.sqrt(2.0 / fan_in)


def build_individual(key, in_c, output_feature_depth):
    k = jax.random.split(key, 8)
    # DAG: block0(input) -> block1(block0), block2(block0); outputs = [0, 1, 2]
    # (block0 exercises the spatial_sum path, blocks 1/2 the fused conv+GAP path)
    w0 = _kaiming_normal(k[0], (in_c, 8), in_c)
    b0 = jnp.zeros((8,), jnp.float32)
    w1 = _kaiming_normal(k[1], (8, 16), 8)
    b1 = jnp.zeros((16,), jnp.float32)
    w2 = _kaiming_normal(k[2], (8, 8), 8)
    b2 = jnp.zeros((8,), jnp.float32)
    blocks = [
        Block([-1], w0, b0),
        Block([0], w1, b1),
        Block([0], w2, b2),
    ]
    output_indices = [0, 1, 2]
    input_feature_depth = 16  # largest channel depth among outputs (match_shapes)
    fc_w = _kaiming_normal(k[3], (output_feature_depth, input_feature_depth),
                           input_feature_depth)
    lim = 1.0 / jnp.sqrt(jnp.asarray(input_feature_depth, jnp.float32))
    fc_b = jax.random.uniform(k[4], (output_feature_depth,), jnp.float32, -lim, lim)
    return Individual(blocks, output_indices, fc_w, fc_b)


if __name__ == "__main__":
    key = jax.random.PRNGKey(0)
    k_model, k_x = jax.random.split(key)

    B, C, H, W = 2, 4, 16, 16
    output_feature_depth = 10

    individual = build_individual(k_model, C, output_feature_depth)
    x = jax.random.normal(k_x, (B, C, H, W), dtype=jnp.float32)

    out = individual(x)
    out = jax.block_until_ready(out)
    assert out.shape == (B, output_feature_depth), out.shape
    assert jnp.all(jnp.isfinite(out))
    print("KERNEL_OK")
</pallas_src>

<mosaic_0001>
module attributes {stable_mosaic.version = 11 : i64} {
  func.func @_pw_conv_relu_kernel(%arg0: i32, %arg1: memref<512x4xbf16, #tpu.memory_space<vmem>>, %arg2: memref<4x8xbf16, #tpu.memory_space<vmem>>, %arg3: memref<1x8xf32, #tpu.memory_space<vmem>>, %arg4: memref<512x8xbf16, #tpu.memory_space<vmem>>) attributes {dimension_semantics = [#tpu.dimension_semantics<parallel>], iteration_bounds = array<i64: 1>, scalar_prefetch = 0 : i64, scratch_operands = 0 : i64, tpu.core_type = #tpu.core_type<tc>, window_params = [{transform_indices = @transform_0, window_bounds = array<i64: 512, 4>}, {pipeline_mode = #tpu.pipeline_mode<synchronous>, transform_indices = @transform_1, window_bounds = array<i64: 4, 8>}, {pipeline_mode = #tpu.pipeline_mode<synchronous>, transform_indices = @transform_2, window_bounds = array<i64: 1, 8>}, {transform_indices = @transform_3, window_bounds = array<i64: 512, 8>}]} {
    %c0 = arith.constant 0 : index
    %c0_0 = arith.constant 0 : index
    %0 = vector.load %arg1[%c0, %c0_0] : memref<512x4xbf16, #tpu.memory_space<vmem>>, vector<512x4xbf16>
    %c0_1 = arith.constant 0 : index
    %c0_2 = arith.constant 0 : index
    %1 = vector.load %arg2[%c0_1, %c0_2] : memref<4x8xbf16, #tpu.memory_space<vmem>>, vector<4x8xbf16>
    %cst = arith.constant dense<0.000000e+00> : vector<512x8xf32>
    %2 = tpu.matmul %0, %1, %cst {dimension_numbers = #tpu.dot_dimension_numbers<[1], [0], [0], [1], [0, 0, 1, 1], [], []>} : vector<512x4xbf16>, vector<4x8xbf16>, vector<512x8xf32> -> vector<512x8xf32>
    %c0_3 = arith.constant 0 : index
    %c0_4 = arith.constant 0 : index
    %3 = vector.load %arg3[%c0_3, %c0_4] : memref<1x8xf32, #tpu.memory_space<vmem>>, vector<1x8xf32>
    %4 = vector.broadcast %3 : vector<1x8xf32> to vector<512x8xf32>
    %5 = arith.addf %2, %4 : vector<512x8xf32>
    %cst_5 = arith.constant 0.000000e+00 : f32
    %6 = vector.broadcast %cst_5 : f32 to vector<512x8xf32>
    %7 = arith.maximumf %5, %6 : vector<512x8xf32>
    %8 = arith.truncf %7 : vector<512x8xf32> to vector<512x8xbf16>
    %c0_6 = arith.constant 0 : index
    %c0_7 = arith.constant 0 : index
    %9 = vector.load %arg4[%c0_6, %c0_7] : memref<512x8xbf16, #tpu.memory_space<vmem>>, vector<512x8xbf16>
    tpu.vector_store %arg4[%c0_6, %c0_7], %8 {strides = array<i32>} : memref<512x8xbf16, #tpu.memory_space<vmem>>, vector<512x8xbf16>,
    return
  }
  func.func @transform_0(%arg0: i32) -> (i32, i32) {
    %c0_i32 = arith.constant 0 : i32
    %c0_i32_0 = arith.constant 0 : i32
    return %arg0, %c0_i32 : i32, i32
  }
  func.func @transform_1(%arg0: i32) -> (i32, i32) {
    %c0_i32 = arith.constant 0 : i32
    %c0_i32_0 = arith.constant 0 : i32
    %c0_i32_1 = arith.constant 0 : i32
    return %c0_i32, %c0_i32_0 : i32, i32
  }
  func.func @transform_2(%arg0: i32) -> (i32, i32) {
    %c0_i32 = arith.constant 0 : i32
    %c0_i32_0 = arith.constant 0 : i32
    %c0_i32_1 = arith.constant 0 : i32
    return %c0_i32, %c0_i32_0 : i32, i32
  }
  func.func @transform_3(%arg0: i32) -> (i32, i32) {
    %c0_i32 = arith.constant 0 : i32
    %c0_i32_0 = arith.constant 0 : i32
    return %arg0, %c0_i32 : i32, i32
  }
}

module attributes {stable_mosaic.version = 11 : i64} {
  func.func @_spatial_sum_kernel(%arg0: i32, %arg1: i32, %arg2: memref<1x256x8xbf16, #tpu.memory_space<vmem>>, %arg3: memref<1x1x8xf32, #tpu.memory_space<vmem>>) attributes {dimension_semantics = [#tpu.dimension_semantics<parallel>, #tpu.dimension_semantics<arbitrary>], iteration_bounds = array<i64: 2, 1>, scalar_prefetch = 0 : i64, scratch_operands = 0 : i64, tpu.core_type = #tpu.core_type<tc>, window_params = [{transform_indices = @transform_0, window_bounds = array<i64: 1, 256, 8>}, {transform_indices = @transform_1, window_bounds = array<i64: 1, 1, 8>}]} {
    %c0_i32 = arith.constant 0 : i32
    %0 = arith.cmpi eq, %arg1, %c0_i32 : i32
    %1 = arith.extui %0 : i1 to i32
    %c0_i32_0 = arith.constant 0 : i32
    %2 = arith.cmpi ne, %1, %c0_i32_0 : i32
    scf.if %2 {
      %cst_10 = arith.constant 0.000000e+00 : f32
      %13 = vector.broadcast %cst_10 : f32 to vector<1x1x8xf32>
      %c0_11 = arith.constant 0 : index
      %c0_12 = arith.constant 0 : index
      %c0_13 = arith.constant 0 : index
      %14 = vector.load %arg3[%c0_11, %c0_12, %c0_13] : memref<1x1x8xf32, #tpu.memory_space<vmem>>, vector<1x1x8xf32>
      tpu.vector_store %arg3[%c0_11, %c0_12, %c0_13], %13 {strides = array<i32>} : memref<1x1x8xf32, #tpu.memory_space<vmem>>, vector<1x1x8xf32>,
    } else {
    }
    %c0 = arith.constant 0 : index
    %c0_1 = arith.constant 0 : index
    %c0_2 = arith.constant 0 : index
    %3 = vector.load %arg2[%c0, %c0_1, %c0_2] : memref<1x256x8xbf16, #tpu.memory_space<vmem>>, vector<1x256x8xbf16>
    %4 = vector.shape_cast %3 : vector<1x256x8xbf16> to vector<256x8xbf16>
    %cst = arith.constant 1.000000e+00 : bf16
    %5 = vector.broadcast %cst : bf16 to vector<1x256xbf16>
    %c0_3 = arith.constant 0 : index
    %c0_4 = arith.constant 0 : index
    %c0_5 = arith.constant 0 : index
    %6 = vector.load %arg3[%c0_3, %c0_4, %c0_5] : memref<1x1x8xf32, #tpu.memory_space<vmem>>, vector<1x1x8xf32>
    %7 = vector.shape_cast %6 : vector<1x1x8xf32> to vector<1x8xf32>
    %cst_6 = arith.constant dense<0.000000e+00> : vector<1x8xf32>
    %8 = tpu.matmul %5, %4, %cst_6 {dimension_numbers = #tpu.dot_dimension_numbers<[1], [0], [0], [1], [0, 0, 1, 1], [], []>} : vector<1x256xbf16>, vector<256x8xbf16>, vector<1x8xf32> -> vector<1x8xf32>
    %9 = arith.addf %7, %8 : vector<1x8xf32>
    %c0_7 = arith.constant 0 : index
    %c0_8 = arith.constant 0 : index
    %c0_9 = arith.constant 0 : index
    %10 = vector.load %arg3[%c0_7, %c0_8, %c0_9] : memref<1x1x8xf32, #tpu.memory_space<vmem>>, vector<1x1x8xf32>
    %11 = vector.shape_cast %10 : vector<1x1x8xf32> to vector<1x8xf32>
    %12 = vector.shape_cast %9 : vector<1x8xf32> to vector<1x1x8xf32>
    tpu.vector_store %arg3[%c0_7, %c0_8, %c0_9], %12 {strides = array<i32>} : memref<1x1x8xf32, #tpu.memory_space<vmem>>, vector<1x1x8xf32>,
    return
  }
  func.func @transform_0(%arg0: i32, %arg1: i32) -> (i32, i32, i32) {
    %c0_i32 = arith.constant 0 : i32
    %c0_i32_0 = arith.constant 0 : i32
    return %arg0, %arg1, %c0_i32 : i32, i32, i32
  }
  func.func @transform_1(%arg0: i32, %arg1: i32) -> (i32, i32, i32) {
    %c0_i32 = arith.constant 0 : i32
    %c0_i32_0 = arith.constant 0 : i32
    %c0_i32_1 = arith.constant 0 : i32
    return %arg0, %c0_i32, %c0_i32_0 : i32, i32, i32
  }
}

module attributes {stable_mosaic.version = 11 : i64} {
  func.func @_pw_conv_relu_gap_kernel(%arg0: i32, %arg1: i32, %arg2: memref<1x256x8xbf16, #tpu.memory_space<vmem>>, %arg3: memref<8x8xbf16, #tpu.memory_space<vmem>>, %arg4: memref<1x8xf32, #tpu.memory_space<vmem>>, %arg5: memref<1x1x8xf32, #tpu.memory_space<vmem>>) attributes {dimension_semantics = [#tpu.dimension_semantics<parallel>, #tpu.dimension_semantics<arbitrary>], iteration_bounds = array<i64: 2, 1>, scalar_prefetch = 0 : i64, scratch_operands = 0 : i64, tpu.core_type = #tpu.core_type<tc>, window_params = [{transform_indices = @transform_0, window_bounds = array<i64: 1, 256, 8>}, {pipeline_mode = #tpu.pipeline_mode<synchronous>, transform_indices = @transform_1, window_bounds = array<i64: 8, 8>}, {pipeline_mode = #tpu.pipeline_mode<synchronous>, transform_indices = @transform_2, window_bounds = array<i64: 1, 8>}, {transform_indices = @transform_3, window_bounds = array<i64: 1, 1, 8>}]} {
    %c0_i32 = arith.constant 0 : i32
    %0 = arith.cmpi eq, %arg1, %c0_i32 : i32
    %1 = arith.extui %0 : i1 to i32
    %c0_i32_0 = arith.constant 0 : i32
    %2 = arith.cmpi ne, %1, %c0_i32_0 : i32
    scf.if %2 {
      %cst_16 = arith.constant 0.000000e+00 : f32
      %20 = vector.broadcast %cst_16 : f32 to vector<1x1x8xf32>
      %c0_17 = arith.constant 0 : index
      %c0_18 = arith.constant 0 : index
      %c0_19 = arith.constant 0 : index
      %21 = vector.load %arg5[%c0_17, %c0_18, %c0_19] : memref<1x1x8xf32, #tpu.memory_space<vmem>>, vector<1x1x8xf32>
      tpu.vector_store %arg5[%c0_17, %c0_18, %c0_19], %20 {strides = array<i32>} : memref<1x1x8xf32, #tpu.memory_space<vmem>>, vector<1x1x8xf32>,
    } else {
    }
    %c0 = arith.constant 0 : index
    %c0_1 = arith.constant 0 : index
    %c0_2 = arith.constant 0 : index
    %3 = vector.load %arg2[%c0, %c0_1, %c0_2] : memref<1x256x8xbf16, #tpu.memory_space<vmem>>, vector<1x256x8xbf16>
    %4 = vector.shape_cast %3 : vector<1x256x8xbf16> to vector<256x8xbf16>
    %c0_3 = arith.constant 0 : index
    %c0_4 = arith.constant 0 : index
    %5 = vector.load %arg3[%c0_3, %c0_4] : memref<8x8xbf16, #tpu.memory_space<vmem>>, vector<8x8xbf16>
    %cst = arith.constant dense<0.000000e+00> : vector<256x8xf32>
    %6 = tpu.matmul %4, %5, %cst {dimension_numbers = #tpu.dot_dimension_numbers<[1], [0], [0], [1], [0, 0, 1, 1], [], []>} : vector<256x8xbf16>, vector<8x8xbf16>, vector<256x8xf32> -> vector<256x8xf32>
    %c0_5 = arith.constant 0 : index
    %c0_6 = arith.constant 0 : index
    %7 = vector.load %arg4[%c0_5, %c0_6] : memref<1x8xf32, #tpu.memory_space<vmem>>, vector<1x8xf32>
    %8 = vector.broadcast %7 : vector<1x8xf32> to vector<256x8xf32>
    %9 = arith.addf %6, %8 : vector<256x8xf32>
    %cst_7 = arith.constant 0.000000e+00 : f32
    %10 = vector.broadcast %cst_7 : f32 to vector<256x8xf32>
    %11 = arith.maximumf %9, %10 : vector<256x8xf32>
    %cst_8 = arith.constant 1.000000e+00 : f32
    %12 = vector.broadcast %cst_8 : f32 to vector<1x256xf32>
    %c0_9 = arith.constant 0 : index
    %c0_10 = arith.constant 0 : index
    %c0_11 = arith.constant 0 : index
    %13 = vector.load %arg5[%c0_9, %c0_10, %c0_11] : memref<1x1x8xf32, #tpu.memory_space<vmem>>, vector<1x1x8xf32>
    %14 = vector.shape_cast %13 : vector<1x1x8xf32> to vector<1x8xf32>
    %cst_12 = arith.constant dense<0.000000e+00> : vector<1x8xf32>
    %15 = tpu.matmul %12, %11, %cst_12 {dimension_numbers = #tpu.dot_dimension_numbers<[1], [0], [0], [1], [0, 0, 1, 1], [], []>} : vector<1x256xf32>, vector<256x8xf32>, vector<1x8xf32> -> vector<1x8xf32>
    %16 = arith.addf %14, %15 : vector<1x8xf32>
    %c0_13 = arith.constant 0 : index
    %c0_14 = arith.constant 0 : index
    %c0_15 = arith.constant 0 : index
    %17 = vector.load %arg5[%c0_13, %c0_14, %c0_15] : memref<1x1x8xf32, #tpu.memory_space<vmem>>, vector<1x1x8xf32>
    %18 = vector.shape_cast %17 : vector<1x1x8xf32> to vector<1x8xf32>
    %19 = vector.shape_cast %16 : vector<1x8xf32> to vector<1x1x8xf32>
    tpu.vector_store %arg5[%c0_13, %c0_14, %c0_15], %19 {strides = array<i32>} : memref<1x1x8xf32, #tpu.memory_space<vmem>>, vector<1x1x8xf32>,
    return
  }
  func.func @transform_0(%arg0: i32, %arg1: i32) -> (i32, i32, i32) {
    %c0_i32 = arith.constant 0 : i32
    %c0_i32_0 = arith.constant 0 : i32
    return %arg0, %arg1, %c0_i32 : i32, i32, i32
  }
  func.func @transform_1(%arg0: i32, %arg1: i32) -> (i32, i32) {
    %c0_i32 = arith.constant 0 : i32
    %c0_i32_0 = arith.constant 0 : i32
    %c0_i32_1 = arith.constant 0 : i32
    return %c0_i32, %c0_i32_0 : i32, i32
  }
  func.func @transform_2(%arg0: i32, %arg1: i32) -> (i32, i32) {
    %c0_i32 = arith.constant 0 : i32
    %c0_i32_0 = arith.constant 0 : i32
    %c0_i32_1 = arith.constant 0 : i32
    return %c0_i32, %c0_i32_0 : i32, i32
  }
  func.func @transform_3(%arg0: i32, %arg1: i32) -> (i32, i32, i32) {
    %c0_i32 = arith.constant 0 : i32
    %c0_i32_0 = arith.constant 0 : i32
    %c0_i32_1 = arith.constant 0 : i32
    return %arg0, %c0_i32, %c0_i32_0 : i32, i32, i32
  }
}

module attributes {stable_mosaic.version = 11 : i64} {
  func.func @_pw_conv_relu_gap_kernel(%arg0: i32, %arg1: i32, %arg2: memref<1x256x8xbf16, #tpu.memory_space<vmem>>, %arg3: memref<8x16xbf16, #tpu.memory_space<vmem>>, %arg4: memref<1x16xf32, #tpu.memory_space<vmem>>, %arg5: memref<1x1x16xf32, #tpu.memory_space<vmem>>) attributes {dimension_semantics = [#tpu.dimension_semantics<parallel>, #tpu.dimension_semantics<arbitrary>], iteration_bounds = array<i64: 2, 1>, scalar_prefetch = 0 : i64, scratch_operands = 0 : i64, tpu.core_type = #tpu.core_type<tc>, window_params = [{transform_indices = @transform_0, window_bounds = array<i64: 1, 256, 8>}, {pipeline_mode = #tpu.pipeline_mode<synchronous>, transform_indices = @transform_1, window_bounds = array<i64: 8, 16>}, {pipeline_mode = #tpu.pipeline_mode<synchronous>, transform_indices = @transform_2, window_bounds = array<i64: 1, 16>}, {transform_indices = @transform_3, window_bounds = array<i64: 1, 1, 16>}]} {
    %c0_i32 = arith.constant 0 : i32
    %0 = arith.cmpi eq, %arg1, %c0_i32 : i32
    %1 = arith.extui %0 : i1 to i32
    %c0_i32_0 = arith.constant 0 : i32
    %2 = arith.cmpi ne, %1, %c0_i32_0 : i32
    scf.if %2 {
      %cst_16 = arith.constant 0.000000e+00 : f32
      %20 = vector.broadcast %cst_16 : f32 to vector<1x1x16xf32>
      %c0_17 = arith.constant 0 : index
      %c0_18 = arith.constant 0 : index
      %c0_19 = arith.constant 0 : index
      %21 = vector.load %arg5[%c0_17, %c0_18, %c0_19] : memref<1x1x16xf32, #tpu.memory_space<vmem>>, vector<1x1x16xf32>
      tpu.vector_store %arg5[%c0_17, %c0_18, %c0_19], %20 {strides = array<i32>} : memref<1x1x16xf32, #tpu.memory_space<vmem>>, vector<1x1x16xf32>,
    } else {
    }
    %c0 = arith.constant 0 : index
    %c0_1 = arith.constant 0 : index
    %c0_2 = arith.constant 0 : index
    %3 = vector.load %arg2[%c0, %c0_1, %c0_2] : memref<1x256x8xbf16, #tpu.memory_space<vmem>>, vector<1x256x8xbf16>
    %4 = vector.shape_cast %3 : vector<1x256x8xbf16> to vector<256x8xbf16>
    %c0_3 = arith.constant 0 : index
    %c0_4 = arith.constant 0 : index
    %5 = vector.load %arg3[%c0_3, %c0_4] : memref<8x16xbf16, #tpu.memory_space<vmem>>, vector<8x16xbf16>
    %cst = arith.constant dense<0.000000e+00> : vector<256x16xf32>
    %6 = tpu.matmul %4, %5, %cst {dimension_numbers = #tpu.dot_dimension_numbers<[1], [0], [0], [1], [0, 0, 1, 1], [], []>} : vector<256x8xbf16>, vector<8x16xbf16>, vector<256x16xf32> -> vector<256x16xf32>
    %c0_5 = arith.constant 0 : index
    %c0_6 = arith.constant 0 : index
    %7 = vector.load %arg4[%c0_5, %c0_6] : memref<1x16xf32, #tpu.memory_space<vmem>>, vector<1x16xf32>
    %8 = vector.broadcast %7 : vector<1x16xf32> to vector<256x16xf32>
    %9 = arith.addf %6, %8 : vector<256x16xf32>
    %cst_7 = arith.constant 0.000000e+00 : f32
    %10 = vector.broadcast %cst_7 : f32 to vector<256x16xf32>
    %11 = arith.maximumf %9, %10 : vector<256x16xf32>
    %cst_8 = arith.constant 1.000000e+00 : f32
    %12 = vector.broadcast %cst_8 : f32 to vector<1x256xf32>
    %c0_9 = arith.constant 0 : index
    %c0_10 = arith.constant 0 : index
    %c0_11 = arith.constant 0 : index
    %13 = vector.load %arg5[%c0_9, %c0_10, %c0_11] : memref<1x1x16xf32, #tpu.memory_space<vmem>>, vector<1x1x16xf32>
    %14 = vector.shape_cast %13 : vector<1x1x16xf32> to vector<1x16xf32>
    %cst_12 = arith.constant dense<0.000000e+00> : vector<1x16xf32>
    %15 = tpu.matmul %12, %11, %cst_12 {dimension_numbers = #tpu.dot_dimension_numbers<[1], [0], [0], [1], [0, 0, 1, 1], [], []>} : vector<1x256xf32>, vector<256x16xf32>, vector<1x16xf32> -> vector<1x16xf32>
    %16 = arith.addf %14, %15 : vector<1x16xf32>
    %c0_13 = arith.constant 0 : index
    %c0_14 = arith.constant 0 : index
    %c0_15 = arith.constant 0 : index
    %17 = vector.load %arg5[%c0_13, %c0_14, %c0_15] : memref<1x1x16xf32, #tpu.memory_space<vmem>>, vector<1x1x16xf32>
    %18 = vector.shape_cast %17 : vector<1x1x16xf32> to vector<1x16xf32>
    %19 = vector.shape_cast %16 : vector<1x16xf32> to vector<1x1x16xf32>
    tpu.vector_store %arg5[%c0_13, %c0_14, %c0_15], %19 {strides = array<i32>} : memref<1x1x16xf32, #tpu.memory_space<vmem>>, vector<1x1x16xf32>,
    return
  }
  func.func @transform_0(%arg0: i32, %arg1: i32) -> (i32, i32, i32) {
    %c0_i32 = arith.constant 0 : i32
    %c0_i32_0 = arith.constant 0 : i32
    return %arg0, %arg1, %c0_i32 : i32, i32, i32
  }
  func.func @transform_1(%arg0: i32, %arg1: i32) -> (i32, i32) {
    %c0_i32 = arith.constant 0 : i32
    %c0_i32_0 = arith.constant 0 : i32
    %c0_i32_1 = arith.constant 0 : i32
    return %c0_i32, %c0_i32_0 : i32, i32
  }
  func.func @transform_2(%arg0: i32, %arg1: i32) -> (i32, i32) {
    %c0_i32 = arith.constant 0 : i32
    %c0_i32_0 = arith.constant 0 : i32
    %c0_i32_1 = arith.constant 0 : i32
    return %c0_i32, %c0_i32_0 : i32, i32
  }
  func.func @transform_3(%arg0: i32, %arg1: i32) -> (i32, i32, i32) {
    %c0_i32 = arith.constant 0 : i32
    %c0_i32_0 = arith.constant 0 : i32
    %c0_i32_1 = arith.constant 0 : i32
    return %arg0, %c0_i32, %c0_i32_0 : i32, i32, i32
  }
}

module attributes {stable_mosaic.version = 11 : i64} {
  func.func @_combine_fc_kernel(%arg0: i32, %arg1: memref<3x2x16xf32, #tpu.memory_space<vmem>>, %arg2: memref<16x10xf32, #tpu.memory_space<vmem>>, %arg3: memref<1x10xf32, #tpu.memory_space<vmem>>, %arg4: memref<2x10xf32, #tpu.memory_space<vmem>>) attributes {dimension_semantics = [#tpu.dimension_semantics<arbitrary>], iteration_bounds = array<i64: 1>, scalar_prefetch = 0 : i64, scratch_operands = 0 : i64, tpu.core_type = #tpu.core_type<tc>, window_params = [{pipeline_mode = #tpu.pipeline_mode<synchronous>, transform_indices = @transform_0, window_bounds = array<i64: 3, 2, 16>}, {pipeline_mode = #tpu.pipeline_mode<synchronous>, transform_indices = @transform_1, window_bounds = array<i64: 16, 10>}, {pipeline_mode = #tpu.pipeline_mode<synchronous>, transform_indices = @transform_2, window_bounds = array<i64: 1, 10>}, {pipeline_mode = #tpu.pipeline_mode<synchronous>, transform_indices = @transform_3, window_bounds = array<i64: 2, 10>}]} {
    %c0 = arith.constant 0 : index
    %c0_0 = arith.constant 0 : index
    %c0_1 = arith.constant 0 : index
    %0 = vector.load %arg1[%c0, %c0_0, %c0_1] : memref<3x2x16xf32, #tpu.memory_space<vmem>>, vector<3x2x16xf32>
    %cst = arith.constant dense<0.000000e+00> : vector<2x16xf32>
    %1 = vector.multi_reduction <add>, %0, %cst [0] : vector<3x2x16xf32> to vector<2x16xf32>
    %cst_2 = arith.constant 3.906250e-03 : f32
    %2 = vector.broadcast %cst_2 : f32 to vector<2x16xf32>
    %3 = arith.mulf %1, %2 : vector<2x16xf32>
    %c0_3 = arith.constant 0 : index
    %c0_4 = arith.constant 0 : index
    %4 = vector.load %arg2[%c0_3, %c0_4] : memref<16x10xf32, #tpu.memory_space<vmem>>, vector<16x10xf32>
    %cst_5 = arith.constant dense<0.000000e+00> : vector<2x10xf32>
    %5 = tpu.matmul %3, %4, %cst_5 {dimension_numbers = #tpu.dot_dimension_numbers<[1], [0], [0], [1], [0, 0, 1, 1], [], []>} : vector<2x16xf32>, vector<16x10xf32>, vector<2x10xf32> -> vector<2x10xf32>
    %c0_6 = arith.constant 0 : index
    %c0_7 = arith.constant 0 : index
    %6 = vector.load %arg3[%c0_6, %c0_7] : memref<1x10xf32, #tpu.memory_space<vmem>>, vector<1x10xf32>
    %7 = vector.broadcast %6 : vector<1x10xf32> to vector<2x10xf32>
    %8 = arith.addf %5, %7 : vector<2x10xf32>
    %c0_8 = arith.constant 0 : index
    %c0_9 = arith.constant 0 : index
    %9 = vector.load %arg4[%c0_8, %c0_9] : memref<2x10xf32, #tpu.memory_space<vmem>>, vector<2x10xf32>
    tpu.vector_store %arg4[%c0_8, %c0_9], %8 {strides = array<i32>} : memref<2x10xf32, #tpu.memory_space<vmem>>, vector<2x10xf32>,
    return
  }
  func.func @transform_0(%arg0: i32) -> (i32, i32, i32) {
    %c0_i32 = arith.constant 0 : i32
    %c0_i32_0 = arith.constant 0 : i32
    %c0_i32_1 = arith.constant 0 : i32
    %c0_i32_2 = arith.constant 0 : i32
    return %c0_i32, %c0_i32_0, %c0_i32_1 : i32, i32, i32
  }
  func.func @transform_1(%arg0: i32) -> (i32, i32) {
    %c0_i32 = arith.constant 0 : i32
    %c0_i32_0 = arith.constant 0 : i32
    %c0_i32_1 = arith.constant 0 : i32
    return %c0_i32, %c0_i32_0 : i32, i32
  }
  func.func @transform_2(%arg0: i32) -> (i32, i32) {
    %c0_i32 = arith.constant 0 : i32
    %c0_i32_0 = arith.constant 0 : i32
    %c0_i32_1 = arith.constant 0 : i32
    return %c0_i32, %c0_i32_0 : i32, i32
  }
  func.func @transform_3(%arg0: i32) -> (i32, i32) {
    %c0_i32 = arith.constant 0 : i32
    %c0_i32_0 = arith.constant 0 : i32
    %c0_i32_1 = arith.constant 0 : i32
    return %c0_i32, %c0_i32_0 : i32, i32
  }
}

</mosaic_0001>

<bundles_post_ra>
// kernel: _forward.6
= control target key start
LH: loop header
LB: loop body
LE: loop exit
PB: predicated region body
PF: predicated region fallthrough
CT: control target
= control target key end

     0   :  { %s508_s6 = smov 0   ;;  %s510_s7 = smov 0   ;;  %s545_s0 = inlined_call_operand.vmem [shape: bf16[2,256,8], index: 0, kind: input, shape index: {}]   ;;  %s546_s1 = inlined_call_operand.vmem [shape: f32[2,1,8], index: 1, kind: output, shape index: {}]  }
   0x1   :  { %s512_s8 = smov 0  }
   0x2 LB: > { %s23_s9 = sadd.s32 1, %s490_s7  ;;  %p386_p0 = scmp.ge.s32.totalorder %s494_s8, 1  ;;  %s494_s8 = sphi %s512_s8, %s11_s8   ;;  %s490_s7 = sphi %s510_s7, %s548_s7   ;;  %s486_s6 = sphi %s508_s6, %s547_s6  }
   0x3   : > { %p25_p1 = scmp.ge.s32.totalorder %s23_s9, 2  ;;  %p106_p2 = scmp.lt.s32.totalorder %s494_s8, 3 }
   0x5   : > { %s550_s9 = smov (%p25_p1, %s23_s9), 0  ;;  %p107_p3 = pnand %p386_p0, %p106_p2 }
   0x6   : > { %p129_p4 = scmp.lt.s32.totalorder (!%p107_p3), %s486_s6, 1  ;;  %v496_v0 = vmov (!%p107_p3), 1065369472   ;;  %vm147_vm0 = vcmask (!%p107_p3), 57344   ;;  %v497_v17 = vmov (!%p107_p3), 0.0  }
   0x7   : > { %110 = sbr.rel (%p107_p3) target bundleno = 268 (0x10c), region = 24  ;;  %310 = vmatprep.mubr.bf16.mxu0 (!%p107_p3), %v496_v0 }
   0xe   : > { %s552_s6 = smov (!%p129_p4, %s486_s6), 1 }
   0xf   : > { %s407_s10 = sshll.u32 %s552_s6, 7  ;;  %s140_s16 = scalar_lea.vmem %s546_s1, %s552_s6 }
  0x10   : > { %s136_s13 = scalar_lea.vmem %s545_s0, %s407_s10  ;;  %148 = vst.msk [vmem:[%s140_s16] sm:$0x1] %vm147_vm0, %v497_v17 }
  0x11   : > { %v456_v1 = vld [vmem:[%s136_s13 + $0x40] sm:$0xff]   ;;  %v458_v3 = vld [vmem:[%s136_s13 + $0x48] sm:$0xff]   ;;  %v460_v5 = vld [vmem:[%s136_s13 + $0x50] sm:$0xff]  }
  0x12   : > { %v457_v2 = vld [vmem:[%s136_s13] sm:$0xff]   ;;  %408 = vmatprep.subr.bf16.mxu0 %v456_v1  ;;  %v459_v4 = vld [vmem:[%s136_s13 + $0x8] sm:$0xff]   ;;  %v461_v6 = vld [vmem:[%s136_s13 + $0x10] sm:$0xff]  }
  0x13   : > { %409 = vmatpush3.bf16.msra.mxu0 %v457_v2  ;;  %v462_v7 = vld [vmem:[%s136_s13 + $0x58] sm:$0xff]   ;;  %v464_v9 = vld [vmem:[%s136_s13 + $0x60] sm:$0xff]   ;;  %v466_v11 = vld [vmem:[%s136_s13 + $0x68] sm:$0xff]  }
  0x14   : > { %410 = vmatprep.subr.bf16.mxu0 %v458_v3  ;;  %v463_v8 = vld [vmem:[%s136_s13 + $0x18] sm:$0xff]   ;;  %v465_v10 = vld [vmem:[%s136_s13 + $0x20] sm:$0xff]   ;;  %v467_v12 = vld [vmem:[%s136_s13 + $0x28] sm:$0xff]  }
  0x15   : > { %v468_v13 = vld [vmem:[%s136_s13 + $0x70] sm:$0xff]   ;;  %v470_v15 = vld [vmem:[%s136_s13 + $0x78] sm:$0xff]  }
  0x16   : > { %v469_v14 = vld [vmem:[%s136_s13 + $0x30] sm:$0xff]   ;;  %v471_v16 = vld [vmem:[%s136_s13 + $0x38] sm:$0xff]  }
  0x17   : > { %411 = vmatpush3.bf16.msra.mxu0 %v459_v4  ;;  %v181_v19 = vld [vmem:[%s140_s16] sm:$0x1] }
  0x18   : > { %412 = vmatprep.subr.bf16.mxu0 %v460_v5 }
  0x1b   : > { %413 = vmatpush3.bf16.msra.mxu0 %v461_v6 }
  0x1c   : > { %414 = vmatprep.subr.bf16.mxu0 %v462_v7 }
  0x1f   : > { %415 = vmatpush3.bf16.msra.mxu0 %v463_v8 }
  0x20   : > { %416 = vmatprep.subr.bf16.mxu0 %v464_v9 }
  0x23   : > { %417 = vmatpush3.bf16.msra.mxu0 %v465_v10 }
  0x24   : > { %418 = vmatprep.subr.bf16.mxu0 %v466_v11 }
  0x27   : > { %419 = vmatpush3.bf16.msra.mxu0 %v467_v12 }
  0x28   : > { %420 = vmatprep.subr.bf16.mxu0 %v468_v13 }
  0x2b   : > { %421 = vmatpush3.bf16.msra.mxu0 %v469_v14 }
  0x2c   : > { %422 = vmatprep.subr.bf16.mxu0 %v470_v15 }
  0x2f   : > { %423 = vmatpush3.bf16.msra.mxu0 %v471_v16 }
  0x32   : > { %311 = vmatmul.mubr.bf16.vlgmr.msra.gmra.mrb[0].mxu0 %v496_v0 }
 0x105   : > { %v424_v18 = vpop.f32.mrb[0].mxu0 }
 0x106   : > { %v425_v20 = vpop.f32.mrb[1].mxu0 }
 0x107   : > { %v426_v21 = vadd.f32 %v425_v20, %v424_v18  ;;  %v427_v22 = vpop.f32.mrb[2].mxu0 }
 0x108   : > { %v428_v23 = vpop.f32.mrb[3].mxu0 }
 0x109   : > { %v318_v24 = vadd.f32 %v426_v21, %v181_v19 }
 0x10b   : > { %320 = vst.msk [vmem:[%s140_s16] sm:$0x1] %vm147_vm0, %v318_v24 }
 0x10c PF: > { %s11_s8 = sadd.s32 1, %s494_s8   ;;  %s547_s6 = smov %s490_s7 }
 0x10d   : > { %p8_p5 = scmp.ge.s32.totalorder %s11_s8, 4   ;;  %s548_s7 = smov %s550_s9 }
 0x10f   :  { %10 = sbr.rel (!%p8_p5) target bundleno = 2 (0x2), region = 58 }

// kernel: _forward.8
= control target key start
LH: loop header
LB: loop body
LE: loop exit
PB: predicated region body
PF: predicated region fallthrough
CT: control target
= control target key end

     0   :  { %s956_s12 = smov 0   ;;  %s958_s13 = smov 0   ;;  %s1069_s0 = inlined_call_operand.vmem [shape: bf16[2,256,8], index: 0, kind: input, shape index: {}]   ;;  %s1070_s1 = inlined_call_operand.vmem [shape: bf16[8,8], index: 1, kind: input, shape index: {}]   ;;  %s1071_s2 = inlined_call_operand.vmem [shape: f32[1,8], index: 2, kind: input, shape index: {}]   ;;  %s1072_s3 = inlined_call_operand.vmem [shape: f32[2,1,8], index: 3, kind: output, shape index: {}]  }
   0x1   :  { %s960_s14 = smov 0  }
   0x2 LB: > { %s25_s15 = sadd.s32 1, %s928_s13  ;;  %p707_p0 = scmp.ge.s32.totalorder %s932_s14, 1  ;;  %s932_s14 = sphi %s960_s14, %s13_s14   ;;  %s928_s13 = sphi %s958_s13, %s1074_s13   ;;  %s924_s12 = sphi %s956_s12, %s1073_s12  }
   0x3   : > { %p27_p1 = scmp.ge.s32.totalorder %s25_s15, 2  ;;  %p156_p2 = scmp.lt.s32.totalorder %s932_s14, 3 }
   0x5   : > { %s1076_s15 = smov (%p27_p1, %s25_s15), 0  ;;  %p157_p3 = pnand %p707_p0, %p156_p2 }
   0x6   : > { %v234_v0 = vld [vmem:[%s1070_s1] sm:$0xf] (!%p157_p3)  ;;  %vm371_vm0 = vcmask (!%p157_p3), 1043456   ;;  %p183_p4 = scmp.lt.s32.totalorder (!%p157_p3), %s924_s12, 1  ;;  %vm322_vm1 = vcmask (!%p157_p3), 64512   ;;  %v934_v18 = vmov (!%p157_p3), 1.0  }
   0x7   : > { %160 = sbr.rel (%p157_p3) target bundleno = 491 (0x1eb), region = 32  ;;  %866 = vmatprep.subr.msk.bf16.mxu0 (!%p157_p3), %vm371_vm0, %v234_v0  ;;  %867 = vmatprep.subr.msk.bf16.mxu1 (!%p157_p3), %vm371_vm0, %v234_v0  ;;  %v373_v1 = vsel (!%p157_p3), %vm371_vm0, %v234_v0, 0  ;;  %v1021_v19 = vld [vmem:[%s1071_s2] ss:$0 sm:$0xff] (!%p157_p3)  ;;  %vm200_vm2 = vcmask (!%p157_p3), 57344  }
   0x8   : > { %799 = vmatpush3.bf16.msra.mxu0 (!%p157_p3), %v373_v1  ;;  %865 = vmatpush3.bf16.msra.mxu1 (!%p157_p3), %v373_v1 }
   0xe   : > { %s1078_s12 = smov (!%p183_p4, %s924_s12), 1 }
   0xf   : > { %s745_s18 = sshll.u32 %s1078_s12, 7  ;;  %s194_s26 = scalar_lea.vmem %s1072_s3, %s1078_s12 }
  0x10   : > { %s983_s21 = scalar_lea.vmem %s1069_s0, %s745_s18 }
  0x11   : > { %v894_v2 = vld [vmem:[%s983_s21] sm:$0xff]   ;;  %v896_v4 = vld [vmem:[%s983_s21 + $0x8] sm:$0xff]   ;;  %v898_v6 = vld [vmem:[%s983_s21 + $0x10] sm:$0xff]  }
  0x12   : > { %v895_v3 = vld [vmem:[%s983_s21 + $0x40] sm:$0xff]   ;;  %800 = vmatprep.mubr.msk.bf16.mxu0 %vm322_vm1, %v894_v2  ;;  %v897_v5 = vld [vmem:[%s983_s21 + $0x48] sm:$0xff]   ;;  %v899_v7 = vld [vmem:[%s983_s21 + $0x50] sm:$0xff]  }
  0x13   : > { %816 = vmatprep.mubr.msk.bf16.mxu1 %vm322_vm1, %v895_v3  ;;  %801 = vmatmul.mubr.msk.bf16.vlgmr.msra.gmra.mrb[0].mxu0 %vm322_vm1, %v896_v4  ;;  %v900_v8 = vld [vmem:[%s983_s21 + $0x18] sm:$0xff]   ;;  %v902_v10 = vld [vmem:[%s983_s21 + $0x20] sm:$0xff]   ;;  %v904_v12 = vld [vmem:[%s983_s21 + $0x28] sm:$0xff]  }
  0x14   : > { %817 = vmatmul.mubr.msk.bf16.vlgmr.msra.gmra.mrb[0].mxu1 %vm322_vm1, %v897_v5  ;;  %804 = vmatprep.mubr.msk.bf16.mxu0 %vm322_vm1, %v898_v6  ;;  %v901_v9 = vld [vmem:[%s983_s21 + $0x58] sm:$0xff]   ;;  %v903_v11 = vld [vmem:[%s983_s21 + $0x60] sm:$0xff]   ;;  %v905_v13 = vld [vmem:[%s983_s21 + $0x68] sm:$0xff]  }
  0x15   : > { %820 = vmatprep.mubr.msk.bf16.mxu1 %vm322_vm1, %v899_v7  ;;  %v906_v14 = vld [vmem:[%s983_s21 + $0x30] sm:$0xff]   ;;  %v908_v16 = vld [vmem:[%s983_s21 + $0x38] sm:$0xff]  }
  0x16   : > { %v907_v15 = vld [vmem:[%s983_s21 + $0x70] sm:$0xff]   ;;  %v909_v17 = vld [vmem:[%s983_s21 + $0x78] sm:$0xff]  }
  0x1b   : > { %805 = vmatmul.mubr.msk.bf16.gmra.mrb[4].mxu0 %vm322_vm1, %v900_v8 }
  0x1c   : > { %821 = vmatmul.mubr.msk.bf16.gmra.mrb[4].mxu1 %vm322_vm1, %v901_v9  ;;  %808 = vmatprep.mubr.msk.bf16.mxu0 %vm322_vm1, %v902_v10 }
  0x1d   : > { %824 = vmatprep.mubr.msk.bf16.mxu1 %vm322_vm1, %v903_v11 }
  0x23   : > { %809 = vmatmul.mubr.msk.bf16.gmra.mrb[8].mxu0 %vm322_vm1, %v904_v12 }
  0x24   : > { %825 = vmatmul.mubr.msk.bf16.gmra.mrb[8].mxu1 %vm322_vm1, %v905_v13  ;;  %812 = vmatprep.mubr.msk.bf16.mxu0 %vm322_vm1, %v906_v14 }
  0x25   : > { %828 = vmatprep.mubr.msk.bf16.mxu1 %vm322_vm1, %v907_v15 }
  0x2b   : > { %813 = vmatmul.mubr.msk.bf16.gmra.mrb[12].mxu0 %vm322_vm1, %v908_v16 }
  0x2c   : > { %829 = vmatmul.mubr.msk.bf16.gmra.mrb[12].mxu1 %vm322_vm1, %v909_v17 }
  0x2d   : > { %633 = vmatprep.mubr.f32.mxu1 %v934_v18 }
  0xe6   : > { %v802_v20 = vpop.f32.mrb[0].mxu0 }
  0xe7   : > { %v418_v21 = vadd.f32 %v802_v20, %v1021_v19  ;;  %v818_v22 = vpop.f32.mrb[0].mxu1  ;;  %v409_v23 = vpop.f32.mrb[1].mxu0 }
  0xe8   : > { %v482_v24 = vadd.f32 %v818_v22, %v1021_v19  ;;  %v410_v25 = vadd.f32 %v1021_v19, %v409_v23  ;;  %v473_v26 = vpop.f32.mrb[1].mxu1  ;;  %v803_v27 = vpop.f32.mrb[2].mxu0 }
  0xe9   : > { %v538_v28 = vmax.f32 %v418_v21, 0.0  ;;  %v474_v29 = vadd.f32 %v1021_v19, %v473_v26  ;;  %v421_v30 = vadd.f32 %v803_v27, %v1021_v19  ;;  %v819_v31 = vpop.f32.mrb[2].mxu1  ;;  %v412_v32 = vpop.f32.mrb[3].mxu0 }
  0xea   : > { %v485_v33 = vadd.f32 %v819_v31, %v1021_v19  ;;  %v413_v34 = vadd.f32 %v1021_v19, %v412_v32  ;;  %v476_v35 = vpop.f32.mrb[3].mxu1  ;;  %v554_v38 = vmax.f32 %v482_v24, 0.0  ;;  %v536_v39 = vmax.f32 %v410_v25, 0.0 }
  0xeb   : > { %v539_v36 = vmax.f32 %v421_v30, 0.0  ;;  %v477_v37 = vadd.f32 %v1021_v19, %v476_v35  ;;  %v552_v42 = vmax.f32 %v474_v29, 0.0 }
  0xec   : > { %v555_v40 = vmax.f32 %v485_v33, 0.0  ;;  %v537_v41 = vmax.f32 %v413_v34, 0.0 }
  0xed   : > { %v838_v43 = vpack.c.bf16 %v539_v36, %v538_v28  ;;  %v553_v44 = vmax.f32 %v477_v37, 0.0 }
  0xee   : > { %v836_v45 = vpack.c.bf16 %v555_v40, %v554_v38  ;;  %v834_v46 = vpack.c.bf16 %v537_v41, %v536_v39  ;;  %v806_v47 = vpop.f32.mrb[4].mxu0 }
  0xef   : > { %v832_v48 = vpack.c.bf16 %v553_v44, %v552_v42  ;;  %v434_v49 = vadd.f32 %v806_v47, %v1021_v19  ;;  %v822_v50 = vpop.f32.mrb[4].mxu1  ;;  %v425_v51 = vpop.f32.mrb[5].mxu0 }
  0xf0   : > { %v498_v52 = vadd.f32 %v822_v50, %v1021_v19  ;;  %v426_v53 = vadd.f32 %v1021_v19, %v425_v51  ;;  %v489_v54 = vpop.f32.mrb[5].mxu1  ;;  %v807_v55 = vpop.f32.mrb[6].mxu0 }
  0xf1   : > { %v542_v56 = vmax.f32 %v434_v49, 0.0  ;;  %v490_v57 = vadd.f32 %v1021_v19, %v489_v54  ;;  %v437_v58 = vadd.f32 %v807_v55, %v1021_v19  ;;  %v823_v59 = vpop.f32.mrb[6].mxu1  ;;  %833 = vmatprep.subr.bf16.mxu1 %v832_v48  ;;  %v428_v60 = vpop.f32.mrb[7].mxu0 }
  0xf2   : > { %v501_v61 = vadd.f32 %v823_v59, %v1021_v19  ;;  %v429_v62 = vadd.f32 %v1021_v19, %v428_v60  ;;  %v492_v63 = vpop.f32.mrb[7].mxu1  ;;  %835 = vmatpush3.bf16.msra.mxu1 %v834_v46  ;;  %v558_v2 = vmax.f32 %v498_v52, 0.0  ;;  %v540_v3 = vmax.f32 %v426_v53, 0.0 }
  0xf3   : > { %v543_v0 = vmax.f32 %v437_v58, 0.0  ;;  %v493_v1 = vadd.f32 %v1021_v19, %v492_v63  ;;  %837 = vmatprep.subr.bf16.mxu1 %v836_v45  ;;  %v556_v6 = vmax.f32 %v490_v57, 0.0 }
  0xf4   : > { %v559_v4 = vmax.f32 %v501_v61, 0.0  ;;  %v541_v5 = vmax.f32 %v429_v62, 0.0 }
  0xf5   : > { %v846_v7 = vpack.c.bf16 %v543_v0, %v542_v56  ;;  %v557_v8 = vmax.f32 %v493_v1, 0.0 }
  0xf6   : > { %v844_v9 = vpack.c.bf16 %v559_v4, %v558_v2  ;;  %v842_v10 = vpack.c.bf16 %v541_v5, %v540_v3  ;;  %839 = vmatpush3.bf16.msra.mxu1 %v838_v43  ;;  %v810_v11 = vpop.f32.mrb[8].mxu0 }
  0xf7   : > { %v840_v12 = vpack.c.bf16 %v557_v8, %v556_v6  ;;  %v450_v13 = vadd.f32 %v810_v11, %v1021_v19  ;;  %v826_v14 = vpop.f32.mrb[8].mxu1  ;;  %v441_v15 = vpop.f32.mrb[9].mxu0 }
  0xf8   : > { %v514_v16 = vadd.f32 %v826_v14, %v1021_v19  ;;  %v442_v17 = vadd.f32 %v1021_v19, %v441_v15  ;;  %v505_v20 = vpop.f32.mrb[9].mxu1  ;;  %v811_v21 = vpop.f32.mrb[10].mxu0 }
  0xf9   : > { %v546_v22 = vmax.f32 %v450_v13, 0.0  ;;  %v506_v23 = vadd.f32 %v1021_v19, %v505_v20  ;;  %v453_v24 = vadd.f32 %v811_v21, %v1021_v19  ;;  %v827_v25 = vpop.f32.mrb[10].mxu1  ;;  %841 = vmatprep.subr.bf16.mxu1 %v840_v12  ;;  %v444_v26 = vpop.f32.mrb[11].mxu0 }
  0xfa   : > { %v517_v27 = vadd.f32 %v827_v25, %v1021_v19  ;;  %v445_v28 = vadd.f32 %v1021_v19, %v444_v26  ;;  %v508_v29 = vpop.f32.mrb[11].mxu1  ;;  %843 = vmatpush3.bf16.msra.mxu1 %v842_v10  ;;  %v562_v32 = vmax.f32 %v514_v16, 0.0  ;;  %v544_v33 = vmax.f32 %v442_v17, 0.0 }
  0xfb   : > { %v547_v30 = vmax.f32 %v453_v24, 0.0  ;;  %v509_v31 = vadd.f32 %v1021_v19, %v508_v29  ;;  %845 = vmatprep.subr.bf16.mxu1 %v844_v9  ;;  %v560_v36 = vmax.f32 %v506_v23, 0.0 }
  0xfc   : > { %v563_v34 = vmax.f32 %v517_v27, 0.0  ;;  %v545_v35 = vmax.f32 %v445_v28, 0.0 }
  0xfd   : > { %v854_v37 = vpack.c.bf16 %v547_v30, %v546_v22  ;;  %v561_v38 = vmax.f32 %v509_v31, 0.0 }
  0xfe   : > { %v852_v39 = vpack.c.bf16 %v563_v34, %v562_v32  ;;  %v850_v40 = vpack.c.bf16 %v545_v35, %v544_v33  ;;  %847 = vmatpush3.bf16.msra.mxu1 %v846_v7  ;;  %v814_v41 = vpop.f32.mrb[12].mxu0 }
  0xff   : > { %v848_v42 = vpack.c.bf16 %v561_v38, %v560_v36  ;;  %v466_v43 = vadd.f32 %v814_v41, %v1021_v19  ;;  %v830_v44 = vpop.f32.mrb[12].mxu1  ;;  %v457_v45 = vpop.f32.mrb[13].mxu0 }
 0x100   : > { %v530_v46 = vadd.f32 %v830_v44, %v1021_v19  ;;  %v458_v47 = vadd.f32 %v1021_v19, %v457_v45  ;;  %v521_v48 = vpop.f32.mrb[13].mxu1  ;;  %v815_v49 = vpop.f32.mrb[14].mxu0 }
 0x101   : > { %v550_v50 = vmax.f32 %v466_v43, 0.0  ;;  %v522_v51 = vadd.f32 %v1021_v19, %v521_v48  ;;  %v469_v52 = vadd.f32 %v815_v49, %v1021_v19  ;;  %v831_v53 = vpop.f32.mrb[14].mxu1  ;;  %849 = vmatprep.subr.bf16.mxu1 %v848_v42  ;;  %v460_v54 = vpop.f32.mrb[15].mxu0 }
 0x102   : > { %v533_v55 = vadd.f32 %v831_v53, %v1021_v19  ;;  %v461_v56 = vadd.f32 %v1021_v19, %v460_v54  ;;  %v524_v57 = vpop.f32.mrb[15].mxu1  ;;  %851 = vmatpush3.bf16.msra.mxu1 %v850_v40  ;;  %v566_v60 = vmax.f32 %v530_v46, 0.0  ;;  %v548_v61 = vmax.f32 %v458_v47, 0.0 }
 0x103   : > { %v551_v58 = vmax.f32 %v469_v52, 0.0  ;;  %v525_v59 = vadd.f32 %v1021_v19, %v524_v57  ;;  %853 = vmatprep.subr.bf16.mxu1 %v852_v39  ;;  %v564_v0 = vmax.f32 %v522_v51, 0.0  ;;  %v935_v19 = vmov 0.0  }
 0x104   : > { %v567_v62 = vmax.f32 %v533_v55, 0.0  ;;  %v549_v63 = vmax.f32 %v461_v56, 0.0  ;;  %201 = vst.msk [vmem:[%s194_s26] sm:$0x1] %vm200_vm2, %v935_v19 }
 0x105   : > { %v862_v1 = vpack.c.bf16 %v551_v58, %v550_v50  ;;  %v565_v2 = vmax.f32 %v525_v59, 0.0 }
 0x106   : > { %v860_v3 = vpack.c.bf16 %v567_v62, %v566_v60  ;;  %v858_v4 = vpack.c.bf16 %v549_v63, %v548_v61  ;;  %855 = vmatpush3.bf16.msra.mxu1 %v854_v37 }
 0x107   : > { %v856_v5 = vpack.c.bf16 %v565_v2, %v564_v0 }
 0x109   : > { %857 = vmatprep.subr.bf16.mxu1 %v856_v5 }
 0x10a   : > { %859 = vmatpush3.bf16.msra.mxu1 %v858_v4 }
 0x10b   : > { %861 = vmatprep.subr.bf16.mxu1 %v860_v3  ;;  %v568_v7 = vld [vmem:[%s194_s26] sm:$0x1] }
 0x10e   : > { %863 = vmatpush3.bf16.msra.mxu1 %v862_v1 }
 0x111   : > { %634 = vmatmul.mubr.f32.vlgmr.msra.gmra.mrb[16].mxu1 %v934_v18 }
 0x1e4   : > { %v795_v6 = vpop.f32.mrb[16].mxu1 }
 0x1e5   : > { %v796_v8 = vpop.f32.mrb[17].mxu1 }
 0x1e6   : > { %v797_v9 = vadd.f32 %v796_v8, %v795_v6 }
 0x1e8   : > { %v639_v10 = vadd.f32 %v797_v9, %v568_v7 }
 0x1ea   : > { %641 = vst.msk [vmem:[%s194_s26] sm:$0x1] %vm200_vm2, %v639_v10 }
 0x1eb PF: > { %s13_s14 = sadd.s32 1, %s932_s14   ;;  %s1073_s12 = smov %s928_s13 }
 0x1ec   : > { %p10_p5 = scmp.ge.s32.totalorder %s13_s14, 4   ;;  %s1074_s13 = smov %s1076_s15 }
 0x1ee   :  { %12 = sbr.rel (!%p10_p5) target bundleno = 2 (0x2), region = 66 }

// kernel: _forward.5
= control target key start
LH: loop header
LB: loop body
LE: loop exit
PB: predicated region body
PF: predicated region fallthrough
CT: control target
= control target key end

     0   :  { %vm344_vm0 = vcmask 1041408   ;;  %vm247_vm1 = vcmask 31744   ;;  %vm957_vm2 = vcmask 60416   ;;  %s1830_s1 = inlined_call_operand.vmem [shape: bf16[4,8], index: 1, kind: input, shape index: {}]   ;;  %s1831_s0 = inlined_call_operand.vmem [shape: bf16[512,4], index: 0, kind: input, shape index: {}]   ;;  %s1832_s2 = inlined_call_operand.vmem [shape: f32[1,8], index: 2, kind: input, shape index: {}]   ;;  %s1833_s3 = inlined_call_operand.vmem [shape: bf16[512,8], index: 3, kind: output, shape index: {}]  }
   0x1   :  { %v79_v0 = vld [vmem:[%s1830_s1] sm:$0x3]  ;;  %v1324_v4 = vld [vmem:[%s1831_s0 + $0x8] sm:$0xff]   ;;  %v1326_v6 = vld [vmem:[%s1831_s0 + $0x10] sm:$0xff]  }
   0x2   :  { %1320 = vmatprep.subr.msk.bf16.mxu0 %vm344_vm0, %v79_v0  ;;  %1321 = vmatprep.subr.msk.bf16.mxu1 %vm344_vm0, %v79_v0  ;;  %v346_v1 = vsel %vm344_vm0, %v79_v0, 0  ;;  %v1322_v2 = vld [vmem:[%s1831_s0] sm:$0xff]   ;;  %v1325_v5 = vld [vmem:[%s1831_s0 + $0x88] sm:$0xff]   ;;  %v1327_v7 = vld [vmem:[%s1831_s0 + $0x90] sm:$0xff]  }
   0x3   :  { %1253 = vmatpush3.bf16.msra.mxu0 %v346_v1  ;;  %1319 = vmatpush3.bf16.msra.mxu1 %v346_v1  ;;  %v1323_v3 = vld [vmem:[%s1831_s0 + $0x80] sm:$0xff]   ;;  %v1328_v8 = vld [vmem:[%s1831_s0 + $0x18] sm:$0xff]   ;;  %v1332_v12 = vld [vmem:[%s1831_s0 + $0x28] sm:$0xff]  }
   0x4   :  { %1254 = vmatprep.mubr.msk.bf16.mxu0 %vm247_vm1, %v1322_v2  ;;  %1286 = vmatprep.mubr.msk.bf16.mxu1 %vm247_vm1, %v1323_v3  ;;  %v1329_v9 = vld [vmem:[%s1831_s0 + $0x98] sm:$0xff]   ;;  %v1330_v10 = vld [vmem:[%s1831_s0 + $0x20] sm:$0xff]   ;;  %v1333_v13 = vld [vmem:[%s1831_s0 + $0xa8] sm:$0xff]  }
   0x5   :  { %v1331_v11 = vld [vmem:[%s1831_s0 + $0xa0] sm:$0xff]   ;;  %v1334_v14 = vld [vmem:[%s1831_s0 + $0x30] sm:$0xff]   ;;  %v1336_v16 = vld [vmem:[%s1831_s0 + $0x38] sm:$0xff]  }
   0x6   :  { %1255 = vmatmul.mubr.msk.bf16.vlgmr.msra.gmra.mrb[0].mxu0 %vm247_vm1, %v1324_v4  ;;  %1287 = vmatmul.mubr.msk.bf16.vlgmr.msra.gmra.mrb[0].mxu1 %vm247_vm1, %v1325_v5  ;;  %v1335_v15 = vld [vmem:[%s1831_s0 + $0xb0] sm:$0xff]   ;;  %v1337_v17 = vld [vmem:[%s1831_s0 + $0xb8] sm:$0xff]   ;;  %v1338_v18 = vld [vmem:[%s1831_s0 + $0x40] sm:$0xff]  }
   0x7   :  { %1258 = vmatprep.mubr.msk.bf16.mxu0 %vm247_vm1, %v1326_v6  ;;  %1290 = vmatprep.mubr.msk.bf16.mxu1 %vm247_vm1, %v1327_v7  ;;  %v1339_v19 = vld [vmem:[%s1831_s0 + $0xc0] sm:$0xff]   ;;  %v1340_v20 = vld [vmem:[%s1831_s0 + $0x48] sm:$0xff]   ;;  %v1342_v22 = vld [vmem:[%s1831_s0 + $0x50] sm:$0xff]  }
   0x8   :  { %v1341_v21 = vld [vmem:[%s1831_s0 + $0xc8] sm:$0xff]   ;;  %v1343_v23 = vld [vmem:[%s1831_s0 + $0xd0] sm:$0xff]   ;;  %v1344_v24 = vld [vmem:[%s1831_s0 + $0x58] sm:$0xff]  }
   0x9   :  { %v1345_v25 = vld [vmem:[%s1831_s0 + $0xd8] sm:$0xff]   ;;  %v1346_v26 = vld [vmem:[%s1831_s0 + $0x60] sm:$0xff]   ;;  %v1348_v28 = vld [vmem:[%s1831_s0 + $0x68] sm:$0xff]  }
   0xa   :  { %v1347_v27 = vld [vmem:[%s1831_s0 + $0xe0] sm:$0xff]   ;;  %v1349_v29 = vld [vmem:[%s1831_s0 + $0xe8] sm:$0xff]   ;;  %v1350_v30 = vld [vmem:[%s1831_s0 + $0x70] sm:$0xff]  }
   0xb   :  { %v1351_v31 = vld [vmem:[%s1831_s0 + $0xf0] sm:$0xff]   ;;  %v1352_v32 = vld [vmem:[%s1831_s0 + $0x78] sm:$0xff]   ;;  %v1508_v34 = vld [vmem:[%s1832_s2] ss:$0 sm:$0xff] }
   0xc   :  { %v1353_v33 = vld [vmem:[%s1831_s0 + $0xf8] sm:$0xff]  }
   0xe   :  { %1259 = vmatmul.mubr.msk.bf16.gmra.mrb[4].mxu0 %vm247_vm1, %v1328_v8  ;;  %1291 = vmatmul.mubr.msk.bf16.gmra.mrb[4].mxu1 %vm247_vm1, %v1329_v9 }
   0xf   :  { %1262 = vmatprep.mubr.msk.bf16.mxu0 %vm247_vm1, %v1330_v10  ;;  %1294 = vmatprep.mubr.msk.bf16.mxu1 %vm247_vm1, %v1331_v11 }
  0x16   :  { %1263 = vmatmul.mubr.msk.bf16.gmra.mrb[8].mxu0 %vm247_vm1, %v1332_v12  ;;  %1295 = vmatmul.mubr.msk.bf16.gmra.mrb[8].mxu1 %vm247_vm1, %v1333_v13 }
  0x17   :  { %1266 = vmatprep.mubr.msk.bf16.mxu0 %vm247_vm1, %v1334_v14  ;;  %1298 = vmatprep.mubr.msk.bf16.mxu1 %vm247_vm1, %v1335_v15 }
  0x1e   :  { %1267 = vmatmul.mubr.msk.bf16.gmra.mrb[12].mxu0 %vm247_vm1, %v1336_v16  ;;  %1299 = vmatmul.mubr.msk.bf16.gmra.mrb[12].mxu1 %vm247_vm1, %v1337_v17 }
  0x1f   :  { %1270 = vmatprep.mubr.msk.bf16.mxu0 %vm247_vm1, %v1338_v18  ;;  %1302 = vmatprep.mubr.msk.bf16.mxu1 %vm247_vm1, %v1339_v19 }
  0x26   :  { %1271 = vmatmul.mubr.msk.bf16.gmra.mrb[16].mxu0 %vm247_vm1, %v1340_v20  ;;  %1303 = vmatmul.mubr.msk.bf16.gmra.mrb[16].mxu1 %vm247_vm1, %v1341_v21 }
  0x27   :  { %1274 = vmatprep.mubr.msk.bf16.mxu0 %vm247_vm1, %v1342_v22  ;;  %1306 = vmatprep.mubr.msk.bf16.mxu1 %vm247_vm1, %v1343_v23 }
  0x2e   :  { %1275 = vmatmul.mubr.msk.bf16.gmra.mrb[20].mxu0 %vm247_vm1, %v1344_v24  ;;  %1307 = vmatmul.mubr.msk.bf16.gmra.mrb[20].mxu1 %vm247_vm1, %v1345_v25 }
  0x2f   :  { %1278 = vmatprep.mubr.msk.bf16.mxu0 %vm247_vm1, %v1346_v26  ;;  %1310 = vmatprep.mubr.msk.bf16.mxu1 %vm247_vm1, %v1347_v27 }
  0x36   :  { %1279 = vmatmul.mubr.msk.bf16.gmra.mrb[24].mxu0 %vm247_vm1, %v1348_v28  ;;  %1311 = vmatmul.mubr.msk.bf16.gmra.mrb[24].mxu1 %vm247_vm1, %v1349_v29 }
  0x37   :  { %1282 = vmatprep.mubr.msk.bf16.mxu0 %vm247_vm1, %v1350_v30  ;;  %1314 = vmatprep.mubr.msk.bf16.mxu1 %vm247_vm1, %v1351_v31 }
  0x3e   :  { %1283 = vmatmul.mubr.msk.bf16.gmra.mrb[28].mxu0 %vm247_vm1, %v1352_v32  ;;  %1315 = vmatmul.mubr.msk.bf16.gmra.mrb[28].mxu1 %vm247_vm1, %v1353_v33 }
  0xd9   :  { %v1256_v35 = vpop.f32.mrb[0].mxu0  ;;  %v1288_v37 = vpop.f32.mrb[0].mxu1 }
  0xda   :  { %v391_v36 = vadd.f32 %v1256_v35, %v1508_v34  ;;  %v382_v38 = vpop.f32.mrb[1].mxu0  ;;  %v519_v39 = vadd.f32 %v1288_v37, %v1508_v34  ;;  %v510_v41 = vpop.f32.mrb[1].mxu1 }
  0xdb   :  { %v383_v40 = vadd.f32 %v1508_v34, %v382_v38  ;;  %v1257_v42 = vpop.f32.mrb[2].mxu0  ;;  %v511_v44 = vadd.f32 %v1508_v34, %v510_v41  ;;  %v1289_v46 = vpop.f32.mrb[2].mxu1 }
  0xdc   :  { %v639_v43 = vmax.f32 %v391_v36, 0.0  ;;  %v394_v45 = vadd.f32 %v1257_v42, %v1508_v34  ;;  %v385_v47 = vpop.f32.mrb[3].mxu0  ;;  %v671_v48 = vmax.f32 %v519_v39, 0.0  ;;  %v522_v50 = vadd.f32 %v1289_v46, %v1508_v34  ;;  %v513_v52 = vpop.f32.mrb[3].mxu1 }
  0xdd   :  { %v637_v49 = vmax.f32 %v383_v40, 0.0  ;;  %v386_v51 = vadd.f32 %v1508_v34, %v385_v47  ;;  %v669_v54 = vmax.f32 %v511_v44, 0.0  ;;  %v514_v56 = vadd.f32 %v1508_v34, %v513_v52 }
  0xde   :  { %v1157_v53 = vpack.c.bf16 %v639_v43, %v639_v43  ;;  %v640_v55 = vmax.f32 %v394_v45, 0.0  ;;  %v1189_v57 = vpack.c.bf16 %v671_v48, %v671_v48  ;;  %v672_v59 = vmax.f32 %v522_v50, 0.0 }
  0xdf   :  { %v1155_v58 = vpack.c.bf16 %v637_v49, %v637_v49  ;;  %v638_v60 = vmax.f32 %v386_v51, 0.0  ;;  %v1187_v61 = vpack.c.bf16 %v669_v54, %v669_v54  ;;  %v670_v63 = vmax.f32 %v514_v56, 0.0 }
  0xe0   :  { %960 = vst.msk [vmem:[%s1833_s3 + $0x8] sm:$0xf] %vm957_vm2, %v1157_v53  ;;  %v1158_v62 = vpack.c.bf16 %v640_v55, %v640_v55  ;;  %992 = vst.msk [vmem:[%s1833_s3 + $0x88] sm:$0xf] %vm957_vm2, %v1189_v57  ;;  %v1190_v0 = vpack.c.bf16 %v672_v59, %v672_v59 }
  0xe1   :  { %958 = vst.msk [vmem:[%s1833_s3] sm:$0xf] %vm957_vm2, %v1155_v58  ;;  %v1156_v1 = vpack.c.bf16 %v638_v60, %v638_v60  ;;  %v1260_v2 = vpop.f32.mrb[4].mxu0  ;;  %990 = vst.msk [vmem:[%s1833_s3 + $0x80] sm:$0xf] %vm957_vm2, %v1187_v61  ;;  %v1188_v3 = vpack.c.bf16 %v670_v63, %v670_v63  ;;  %v1292_v5 = vpop.f32.mrb[4].mxu1 }
  0xe2   :  { %961 = vst.msk [vmem:[%s1833_s3 + $0xc] sm:$0xf] %vm957_vm2, %v1158_v62  ;;  %v407_v4 = vadd.f32 %v1260_v2, %v1508_v34  ;;  %v398_v6 = vpop.f32.mrb[5].mxu0  ;;  %993 = vst.msk [vmem:[%s1833_s3 + $0x8c] sm:$0xf] %vm957_vm2, %v1190_v0  ;;  %v535_v7 = vadd.f32 %v1292_v5, %v1508_v34  ;;  %v526_v9 = vpop.f32.mrb[5].mxu1 }
  0xe3   :  { %959 = vst.msk [vmem:[%s1833_s3 + $0x4] sm:$0xf] %vm957_vm2, %v1156_v1  ;;  %v399_v8 = vadd.f32 %v1508_v34, %v398_v6  ;;  %v1261_v10 = vpop.f32.mrb[6].mxu0  ;;  %991 = vst.msk [vmem:[%s1833_s3 + $0x84] sm:$0xf] %vm957_vm2, %v1188_v3  ;;  %v527_v12 = vadd.f32 %v1508_v34, %v526_v9  ;;  %v1293_v14 = vpop.f32.mrb[6].mxu1 }
  0xe4   :  { %v643_v11 = vmax.f32 %v407_v4, 0.0  ;;  %v410_v13 = vadd.f32 %v1261_v10, %v1508_v34  ;;  %v401_v15 = vpop.f32.mrb[7].mxu0  ;;  %v675_v16 = vmax.f32 %v535_v7, 0.0  ;;  %v538_v18 = vadd.f32 %v1293_v14, %v1508_v34  ;;  %v529_v20 = vpop.f32.mrb[7].mxu1 }
  0xe5   :  { %v641_v17 = vmax.f32 %v399_v8, 0.0  ;;  %v402_v19 = vadd.f32 %v1508_v34, %v401_v15  ;;  %v673_v22 = vmax.f32 %v527_v12, 0.0  ;;  %v530_v24 = vadd.f32 %v1508_v34, %v529_v20 }
  0xe6   :  { %v1161_v21 = vpack.c.bf16 %v643_v11, %v643_v11  ;;  %v644_v23 = vmax.f32 %v410_v13, 0.0  ;;  %v1193_v25 = vpack.c.bf16 %v675_v16, %v675_v16  ;;  %v676_v27 = vmax.f32 %v538_v18, 0.0 }
  0xe7   :  { %v1159_v26 = vpack.c.bf16 %v641_v17, %v641_v17  ;;  %v642_v28 = vmax.f32 %v402_v19, 0.0  ;;  %v1191_v29 = vpack.c.bf16 %v673_v22, %v673_v22  ;;  %v674_v31 = vmax.f32 %v530_v24, 0.0 }
  0xe8   :  { %964 = vst.msk [vmem:[%s1833_s3 + $0x18] sm:$0xf] %vm957_vm2, %v1161_v21  ;;  %v1162_v30 = vpack.c.bf16 %v644_v23, %v644_v23  ;;  %996 = vst.msk [vmem:[%s1833_s3 + $0x98] sm:$0xf] %vm957_vm2, %v1193_v25  ;;  %v1194_v32 = vpack.c.bf16 %v676_v27, %v676_v27 }
  0xe9   :  { %962 = vst.msk [vmem:[%s1833_s3 + $0x10] sm:$0xf] %vm957_vm2, %v1159_v26  ;;  %v1160_v33 = vpack.c.bf16 %v642_v28, %v642_v28  ;;  %v1264_v35 = vpop.f32.mrb[8].mxu0  ;;  %994 = vst.msk [vmem:[%s1833_s3 + $0x90] sm:$0xf] %vm957_vm2, %v1191_v29  ;;  %v1192_v36 = vpack.c.bf16 %v674_v31, %v674_v31  ;;  %v1296_v38 = vpop.f32.mrb[8].mxu1 }
  0xea   :  { %965 = vst.msk [vmem:[%s1833_s3 + $0x1c] sm:$0xf] %vm957_vm2, %v1162_v30  ;;  %v423_v37 = vadd.f32 %v1264_v35, %v1508_v34  ;;  %v414_v39 = vpop.f32.mrb[9].mxu0  ;;  %997 = vst.msk [vmem:[%s1833_s3 + $0x9c] sm:$0xf] %vm957_vm2, %v1194_v32  ;;  %v551_v40 = vadd.f32 %v1296_v38, %v1508_v34  ;;  %v542_v42 = vpop.f32.mrb[9].mxu1 }
  0xeb   :  { %963 = vst.msk [vmem:[%s1833_s3 + $0x14] sm:$0xf] %vm957_vm2, %v1160_v33  ;;  %v415_v41 = vadd.f32 %v1508_v34, %v414_v39  ;;  %v1265_v43 = vpop.f32.mrb[10].mxu0  ;;  %995 = vst.msk [vmem:[%s1833_s3 + $0x94] sm:$0xf] %vm957_vm2, %v1192_v36  ;;  %v543_v45 = vadd.f32 %v1508_v34, %v542_v42  ;;  %v1297_v47 = vpop.f32.mrb[10].mxu1 }
  0xec   :  { %v647_v44 = vmax.f32 %v423_v37, 0.0  ;;  %v426_v46 = vadd.f32 %v1265_v43, %v1508_v34  ;;  %v417_v48 = vpop.f32.mrb[11].mxu0  ;;  %v679_v49 = vmax.f32 %v551_v40, 0.0  ;;  %v554_v51 = vadd.f32 %v1297_v47, %v1508_v34  ;;  %v545_v53 = vpop.f32.mrb[11].mxu1 }
  0xed   :  { %v645_v50 = vmax.f32 %v415_v41, 0.0  ;;  %v418_v52 = vadd.f32 %v1508_v34, %v417_v48  ;;  %v677_v55 = vmax.f32 %v543_v45, 0.0  ;;  %v546_v57 = vadd.f32 %v1508_v34, %v545_v53 }
  0xee   :  { %v1165_v54 = vpack.c.bf16 %v647_v44, %v647_v44  ;;  %v648_v56 = vmax.f32 %v426_v46, 0.0  ;;  %v1197_v58 = vpack.c.bf16 %v679_v49, %v679_v49  ;;  %v680_v60 = vmax.f32 %v554_v51, 0.0 }
  0xef   :  { %v1163_v59 = vpack.c.bf16 %v645_v50, %v645_v50  ;;  %v646_v61 = vmax.f32 %v418_v52, 0.0  ;;  %v1195_v62 = vpack.c.bf16 %v677_v55, %v677_v55  ;;  %v678_v0 = vmax.f32 %v546_v57, 0.0 }
  0xf0   :  { %968 = vst.msk [vmem:[%s1833_s3 + $0x28] sm:$0xf] %vm957_vm2, %v1165_v54  ;;  %v1166_v63 = vpack.c.bf16 %v648_v56, %v648_v56  ;;  %1000 = vst.msk [vmem:[%s1833_s3 + $0xa8] sm:$0xf] %vm957_vm2, %v1197_v58  ;;  %v1198_v1 = vpack.c.bf16 %v680_v60, %v680_v60 }
  0xf1   :  { %966 = vst.msk [vmem:[%s1833_s3 + $0x20] sm:$0xf] %vm957_vm2, %v1163_v59  ;;  %v1164_v2 = vpack.c.bf16 %v646_v61, %v646_v61  ;;  %v1268_v3 = vpop.f32.mrb[12].mxu0  ;;  %998 = vst.msk [vmem:[%s1833_s3 + $0xa0] sm:$0xf] %vm957_vm2, %v1195_v62  ;;  %v1196_v4 = vpack.c.bf16 %v678_v0, %v678_v0  ;;  %v1300_v6 = vpop.f32.mrb[12].mxu1 }
  0xf2   :  { %969 = vst.msk [vmem:[%s1833_s3 + $0x2c] sm:$0xf] %vm957_vm2, %v1166_v63  ;;  %v439_v5 = vadd.f32 %v1268_v3, %v1508_v34  ;;  %v430_v7 = vpop.f32.mrb[13].mxu0  ;;  %1001 = vst.msk [vmem:[%s1833_s3 + $0xac] sm:$0xf] %vm957_vm2, %v1198_v1  ;;  %v567_v8 = vadd.f32 %v1300_v6, %v1508_v34  ;;  %v558_v10 = vpop.f32.mrb[13].mxu1 }
  0xf3   :  { %967 = vst.msk [vmem:[%s1833_s3 + $0x24] sm:$0xf] %vm957_vm2, %v1164_v2  ;;  %v431_v9 = vadd.f32 %v1508_v34, %v430_v7  ;;  %v1269_v11 = vpop.f32.mrb[14].mxu0  ;;  %999 = vst.msk [vmem:[%s1833_s3 + $0xa4] sm:$0xf] %vm957_vm2, %v1196_v4  ;;  %v559_v13 = vadd.f32 %v1508_v34, %v558_v10  ;;  %v1301_v15 = vpop.f32.mrb[14].mxu1 }
  0xf4   :  { %v651_v12 = vmax.f32 %v439_v5, 0.0  ;;  %v442_v14 = vadd.f32 %v1269_v11, %v1508_v34  ;;  %v433_v16 = vpop.f32.mrb[15].mxu0  ;;  %v683_v17 = vmax.f32 %v567_v8, 0.0  ;;  %v570_v19 = vadd.f32 %v1301_v15, %v1508_v34  ;;  %v561_v21 = vpop.f32.mrb[15].mxu1 }
  0xf5   :  { %v649_v18 = vmax.f32 %v431_v9, 0.0  ;;  %v434_v20 = vadd.f32 %v1508_v34, %v433_v16  ;;  %v681_v23 = vmax.f32 %v559_v13, 0.0  ;;  %v562_v25 = vadd.f32 %v1508_v34, %v561_v21 }
  0xf6   :  { %v1169_v22 = vpack.c.bf16 %v651_v12, %v651_v12  ;;  %v652_v24 = vmax.f32 %v442_v14, 0.0  ;;  %v1201_v26 = vpack.c.bf16 %v683_v17, %v683_v17  ;;  %v684_v28 = vmax.f32 %v570_v19, 0.0 }
  0xf7   :  { %v1167_v27 = vpack.c.bf16 %v649_v18, %v649_v18  ;;  %v650_v29 = vmax.f32 %v434_v20, 0.0  ;;  %v1199_v30 = vpack.c.bf16 %v681_v23, %v681_v23  ;;  %v682_v32 = vmax.f32 %v562_v25, 0.0 }
  0xf8   :  { %972 = vst.msk [vmem:[%s1833_s3 + $0x38] sm:$0xf] %vm957_vm2, %v1169_v22  ;;  %v1170_v31 = vpack.c.bf16 %v652_v24, %v652_v24  ;;  %1004 = vst.msk [vmem:[%s1833_s3 + $0xb8] sm:$0xf] %vm957_vm2, %v1201_v26  ;;  %v1202_v33 = vpack.c.bf16 %v684_v28, %v684_v28 }
  0xf9   :  { %970 = vst.msk [vmem:[%s1833_s3 + $0x30] sm:$0xf] %vm957_vm2, %v1167_v27  ;;  %v1168_v35 = vpack.c.bf16 %v650_v29, %v650_v29  ;;  %v1272_v36 = vpop.f32.mrb[16].mxu0  ;;  %1002 = vst.msk [vmem:[%s1833_s3 + $0xb0] sm:$0xf] %vm957_vm2, %v1199_v30  ;;  %v1200_v37 = vpack.c.bf16 %v682_v32, %v682_v32  ;;  %v1304_v39 = vpop.f32.mrb[16].mxu1 }
  0xfa   :  { %973 = vst.msk [vmem:[%s1833_s3 + $0x3c] sm:$0xf] %vm957_vm2, %v1170_v31  ;;  %v455_v38 = vadd.f32 %v1272_v36, %v1508_v34  ;;  %v446_v40 = vpop.f32.mrb[17].mxu0  ;;  %1005 = vst.msk [vmem:[%s1833_s3 + $0xbc] sm:$0xf] %vm957_vm2, %v1202_v33  ;;  %v583_v41 = vadd.f32 %v1304_v39, %v1508_v34  ;;  %v574_v43 = vpop.f32.mrb[17].mxu1 }
  0xfb   :  { %971 = vst.msk [vmem:[%s1833_s3 + $0x34] sm:$0xf] %vm957_vm2, %v1168_v35  ;;  %v447_v42 = vadd.f32 %v1508_v34, %v446_v40  ;;  %v1273_v44 = vpop.f32.mrb[18].mxu0  ;;  %1003 = vst.msk [vmem:[%s1833_s3 + $0xb4] sm:$0xf] %vm957_vm2, %v1200_v37  ;;  %v575_v46 = vadd.f32 %v1508_v34, %v574_v43  ;;  %v1305_v48 = vpop.f32.mrb[18].mxu1 }
  0xfc   :  { %v655_v45 = vmax.f32 %v455_v38, 0.0  ;;  %v458_v47 = vadd.f32 %v1273_v44, %v1508_v34  ;;  %v449_v49 = vpop.f32.mrb[19].mxu0  ;;  %v687_v50 = vmax.f32 %v583_v41, 0.0  ;;  %v586_v52 = vadd.f32 %v1305_v48, %v1508_v34  ;;  %v577_v54 = vpop.f32.mrb[19].mxu1 }
  0xfd   :  { %v653_v51 = vmax.f32 %v447_v42, 0.0  ;;  %v450_v53 = vadd.f32 %v1508_v34, %v449_v49  ;;  %v685_v56 = vmax.f32 %v575_v46, 0.0  ;;  %v578_v58 = vadd.f32 %v1508_v34, %v577_v54 }
  0xfe   :  { %v1173_v55 = vpack.c.bf16 %v655_v45, %v655_v45  ;;  %v656_v57 = vmax.f32 %v458_v47, 0.0  ;;  %v1205_v59 = vpack.c.bf16 %v687_v50, %v687_v50  ;;  %v688_v61 = vmax.f32 %v586_v52, 0.0 }
  0xff   :  { %v1171_v60 = vpack.c.bf16 %v653_v51, %v653_v51  ;;  %v654_v62 = vmax.f32 %v450_v53, 0.0  ;;  %v1203_v63 = vpack.c.bf16 %v685_v56, %v685_v56  ;;  %v686_v1 = vmax.f32 %v578_v58, 0.0 }
 0x100   :  { %976 = vst.msk [vmem:[%s1833_s3 + $0x48] sm:$0xf] %vm957_vm2, %v1173_v55  ;;  %v1174_v0 = vpack.c.bf16 %v656_v57, %v656_v57  ;;  %1008 = vst.msk [vmem:[%s1833_s3 + $0xc8] sm:$0xf] %vm957_vm2, %v1205_v59  ;;  %v1206_v2 = vpack.c.bf16 %v688_v61, %v688_v61 }
 0x101   :  { %974 = vst.msk [vmem:[%s1833_s3 + $0x40] sm:$0xf] %vm957_vm2, %v1171_v60  ;;  %v1172_v3 = vpack.c.bf16 %v654_v62, %v654_v62  ;;  %v1276_v4 = vpop.f32.mrb[20].mxu0  ;;  %1006 = vst.msk [vmem:[%s1833_s3 + $0xc0] sm:$0xf] %vm957_vm2, %v1203_v63  ;;  %v1204_v5 = vpack.c.bf16 %v686_v1, %v686_v1  ;;  %v1308_v7 = vpop.f32.mrb[20].mxu1 }
 0x102   :  { %977 = vst.msk [vmem:[%s1833_s3 + $0x4c] sm:$0xf] %vm957_vm2, %v1174_v0  ;;  %v471_v6 = vadd.f32 %v1276_v4, %v1508_v34  ;;  %v462_v8 = vpop.f32.mrb[21].mxu0  ;;  %1009 = vst.msk [vmem:[%s1833_s3 + $0xcc] sm:$0xf] %vm957_vm2, %v1206_v2  ;;  %v599_v9 = vadd.f32 %v1308_v7, %v1508_v34  ;;  %v590_v11 = vpop.f32.mrb[21].mxu1 }
 0x103   :  { %975 = vst.msk [vmem:[%s1833_s3 + $0x44] sm:$0xf] %vm957_vm2, %v1172_v3  ;;  %v463_v10 = vadd.f32 %v1508_v34, %v462_v8  ;;  %v1277_v12 = vpop.f32.mrb[22].mxu0  ;;  %1007 = vst.msk [vmem:[%s1833_s3 + $0xc4] sm:$0xf] %vm957_vm2, %v1204_v5  ;;  %v591_v14 = vadd.f32 %v1508_v34, %v590_v11  ;;  %v1309_v16 = vpop.f32.mrb[22].mxu1 }
 0x104   :  { %v659_v13 = vmax.f32 %v471_v6, 0.0  ;;  %v474_v15 = vadd.f32 %v1277_v12, %v1508_v34  ;;  %v465_v17 = vpop.f32.mrb[23].mxu0  ;;  %v691_v18 = vmax.f32 %v599_v9, 0.0  ;;  %v602_v20 = vadd.f32 %v1309_v16, %v1508_v34  ;;  %v593_v22 = vpop.f32.mrb[23].mxu1 }
 0x105   :  { %v657_v19 = vmax.f32 %v463_v10, 0.0  ;;  %v466_v21 = vadd.f32 %v1508_v34, %v465_v17  ;;  %v689_v24 = vmax.f32 %v591_v14, 0.0  ;;  %v594_v26 = vadd.f32 %v1508_v34, %v593_v22 }
 0x106   :  { %v1177_v23 = vpack.c.bf16 %v659_v13, %v659_v13  ;;  %v660_v25 = vmax.f32 %v474_v15, 0.0  ;;  %v1209_v27 = vpack.c.bf16 %v691_v18, %v691_v18  ;;  %v692_v29 = vmax.f32 %v602_v20, 0.0 }
 0x107   :  { %v1175_v28 = vpack.c.bf16 %v657_v19, %v657_v19  ;;  %v658_v30 = vmax.f32 %v466_v21, 0.0  ;;  %v1207_v31 = vpack.c.bf16 %v689_v24, %v689_v24  ;;  %v690_v33 = vmax.f32 %v594_v26, 0.0 }
 0x108   :  { %980 = vst.msk [vmem:[%s1833_s3 + $0x58] sm:$0xf] %vm957_vm2, %v1177_v23  ;;  %v1178_v32 = vpack.c.bf16 %v660_v25, %v660_v25  ;;  %1012 = vst.msk [vmem:[%s1833_s3 + $0xd8] sm:$0xf] %vm957_vm2, %v1209_v27  ;;  %v1210_v35 = vpack.c.bf16 %v692_v29, %v692_v29 }
 0x109   :  { %978 = vst.msk [vmem:[%s1833_s3 + $0x50] sm:$0xf] %vm957_vm2, %v1175_v28  ;;  %v1176_v36 = vpack.c.bf16 %v658_v30, %v658_v30  ;;  %v1280_v37 = vpop.f32.mrb[24].mxu0  ;;  %1010 = vst.msk [vmem:[%s1833_s3 + $0xd0] sm:$0xf] %vm957_vm2, %v1207_v31  ;;  %v1208_v38 = vpack.c.bf16 %v690_v33, %v690_v33  ;;  %v1312_v40 = vpop.f32.mrb[24].mxu1 }
 0x10a   :  { %981 = vst.msk [vmem:[%s1833_s3 + $0x5c] sm:$0xf] %vm957_vm2, %v1178_v32  ;;  %v487_v39 = vadd.f32 %v1280_v37, %v1508_v34  ;;  %v478_v41 = vpop.f32.mrb[25].mxu0  ;;  %1013 = vst.msk [vmem:[%s1833_s3 + $0xdc] sm:$0xf] %vm957_vm2, %v1210_v35  ;;  %v615_v42 = vadd.f32 %v1312_v40, %v1508_v34  ;;  %v606_v44 = vpop.f32.mrb[25].mxu1 }
 0x10b   :  { %979 = vst.msk [vmem:[%s1833_s3 + $0x54] sm:$0xf] %vm957_vm2, %v1176_v36  ;;  %v479_v43 = vadd.f32 %v1508_v34, %v478_v41  ;;  %v1281_v45 = vpop.f32.mrb[26].mxu0  ;;  %1011 = vst.msk [vmem:[%s1833_s3 + $0xd4] sm:$0xf] %vm957_vm2, %v1208_v38  ;;  %v607_v47 = vadd.f32 %v1508_v34, %v606_v44  ;;  %v1313_v49 = vpop.f32.mrb[26].mxu1 }
 0x10c   :  { %v663_v46 = vmax.f32 %v487_v39, 0.0  ;;  %v490_v48 = vadd.f32 %v1281_v45, %v1508_v34  ;;  %v481_v50 = vpop.f32.mrb[27].mxu0  ;;  %v695_v51 = vmax.f32 %v615_v42, 0.0  ;;  %v618_v53 = vadd.f32 %v1313_v49, %v1508_v34  ;;  %v609_v55 = vpop.f32.mrb[27].mxu1 }
 0x10d   :  { %v661_v52 = vmax.f32 %v479_v43, 0.0  ;;  %v482_v54 = vadd.f32 %v1508_v34, %v481_v50  ;;  %v693_v57 = vmax.f32 %v607_v47, 0.0  ;;  %v610_v59 = vadd.f32 %v1508_v34, %v609_v55 }
 0x10e   :  { %v1181_v56 = vpack.c.bf16 %v663_v46, %v663_v46  ;;  %v664_v58 = vmax.f32 %v490_v48, 0.0  ;;  %v1213_v60 = vpack.c.bf16 %v695_v51, %v695_v51  ;;  %v696_v62 = vmax.f32 %v618_v53, 0.0 }
 0x10f   :  { %v1179_v61 = vpack.c.bf16 %v661_v52, %v661_v52  ;;  %v662_v63 = vmax.f32 %v482_v54, 0.0  ;;  %v1211_v0 = vpack.c.bf16 %v693_v57, %v693_v57  ;;  %v694_v2 = vmax.f32 %v610_v59, 0.0 }
 0x110   :  { %984 = vst.msk [vmem:[%s1833_s3 + $0x68] sm:$0xf] %vm957_vm2, %v1181_v56  ;;  %v1182_v1 = vpack.c.bf16 %v664_v58, %v664_v58  ;;  %1016 = vst.msk [vmem:[%s1833_s3 + $0xe8] sm:$0xf] %vm957_vm2, %v1213_v60  ;;  %v1214_v3 = vpack.c.bf16 %v696_v62, %v696_v62 }
 0x111   :  { %982 = vst.msk [vmem:[%s1833_s3 + $0x60] sm:$0xf] %vm957_vm2, %v1179_v61  ;;  %v1180_v4 = vpack.c.bf16 %v662_v63, %v662_v63  ;;  %v1284_v5 = vpop.f32.mrb[28].mxu0  ;;  %1014 = vst.msk [vmem:[%s1833_s3 + $0xe0] sm:$0xf] %vm957_vm2, %v1211_v0  ;;  %v1212_v6 = vpack.c.bf16 %v694_v2, %v694_v2  ;;  %v1316_v8 = vpop.f32.mrb[28].mxu1 }
 0x112   :  { %985 = vst.msk [vmem:[%s1833_s3 + $0x6c] sm:$0xf] %vm957_vm2, %v1182_v1  ;;  %v503_v7 = vadd.f32 %v1284_v5, %v1508_v34  ;;  %v494_v9 = vpop.f32.mrb[29].mxu0  ;;  %1017 = vst.msk [vmem:[%s1833_s3 + $0xec] sm:$0xf] %vm957_vm2, %v1214_v3  ;;  %v631_v10 = vadd.f32 %v1316_v8, %v1508_v34  ;;  %v622_v12 = vpop.f32.mrb[29].mxu1 }
 0x113   :  { %983 = vst.msk [vmem:[%s1833_s3 + $0x64] sm:$0xf] %vm957_vm2, %v1180_v4  ;;  %v495_v11 = vadd.f32 %v1508_v34, %v494_v9  ;;  %v1285_v13 = vpop.f32.mrb[30].mxu0  ;;  %1015 = vst.msk [vmem:[%s1833_s3 + $0xe4] sm:$0xf] %vm957_vm2, %v1212_v6  ;;  %v623_v15 = vadd.f32 %v1508_v34, %v622_v12  ;;  %v1317_v17 = vpop.f32.mrb[30].mxu1 }
 0x114   :  { %v667_v14 = vmax.f32 %v503_v7, 0.0  ;;  %v506_v16 = vadd.f32 %v1285_v13, %v1508_v34  ;;  %v497_v18 = vpop.f32.mrb[31].mxu0  ;;  %v699_v19 = vmax.f32 %v631_v10, 0.0  ;;  %v634_v21 = vadd.f32 %v1317_v17, %v1508_v34  ;;  %v625_v23 = vpop.f32.mrb[31].mxu1 }
 0x115   :  { %v665_v20 = vmax.f32 %v495_v11, 0.0  ;;  %v498_v22 = vadd.f32 %v1508_v34, %v497_v18  ;;  %v697_v25 = vmax.f32 %v623_v15, 0.0  ;;  %v626_v27 = vadd.f32 %v1508_v34, %v625_v23 }
 0x116   :  { %v1185_v24 = vpack.c.bf16 %v667_v14, %v667_v14  ;;  %v668_v26 = vmax.f32 %v506_v16, 0.0  ;;  %v1217_v28 = vpack.c.bf16 %v699_v19, %v699_v19  ;;  %v700_v30 = vmax.f32 %v634_v21, 0.0 }
 0x117   :  { %v1183_v29 = vpack.c.bf16 %v665_v20, %v665_v20  ;;  %v666_v31 = vmax.f32 %v498_v22, 0.0  ;;  %v1215_v32 = vpack.c.bf16 %v697_v25, %v697_v25  ;;  %v698_v35 = vmax.f32 %v626_v27, 0.0 }
 0x118   :  { %988 = vst.msk [vmem:[%s1833_s3 + $0x78] sm:$0xf] %vm957_vm2, %v1185_v24  ;;  %v1186_v33 = vpack.c.bf16 %v668_v26, %v668_v26  ;;  %1020 = vst.msk [vmem:[%s1833_s3 + $0xf8] sm:$0xf] %vm957_vm2, %v1217_v28  ;;  %v1218_v34 = vpack.c.bf16 %v700_v30, %v700_v30 }
 0x119   :  { %986 = vst.msk [vmem:[%s1833_s3 + $0x70] sm:$0xf] %vm957_vm2, %v1183_v29  ;;  %v1184_v36 = vpack.c.bf16 %v666_v31, %v666_v31  ;;  %1018 = vst.msk [vmem:[%s1833_s3 + $0xf0] sm:$0xf] %vm957_vm2, %v1215_v32  ;;  %v1216_v37 = vpack.c.bf16 %v698_v35, %v698_v35 }
 0x11a   :  { %989 = vst.msk [vmem:[%s1833_s3 + $0x7c] sm:$0xf] %vm957_vm2, %v1186_v33  ;;  %1021 = vst.msk [vmem:[%s1833_s3 + $0xfc] sm:$0xf] %vm957_vm2, %v1218_v34 }
 0x11b   :  { %987 = vst.msk [vmem:[%s1833_s3 + $0x74] sm:$0xf] %vm957_vm2, %v1184_v36  ;;  %1019 = vst.msk [vmem:[%s1833_s3 + $0xf4] sm:$0xf] %vm957_vm2, %v1216_v37 }

// kernel: _forward.7
= control target key start
LH: loop header
LB: loop body
LE: loop exit
PB: predicated region body
PF: predicated region fallthrough
CT: control target
= control target key end

     0   :  { %s956_s12 = smov 0   ;;  %s958_s13 = smov 0   ;;  %s1069_s0 = inlined_call_operand.vmem [shape: bf16[2,256,8], index: 0, kind: input, shape index: {}]   ;;  %s1070_s1 = inlined_call_operand.vmem [shape: bf16[8,16], index: 1, kind: input, shape index: {}]   ;;  %s1071_s2 = inlined_call_operand.vmem [shape: f32[1,16], index: 2, kind: input, shape index: {}]   ;;  %s1072_s3 = inlined_call_operand.vmem [shape: f32[2,1,16], index: 3, kind: output, shape index: {}]  }
   0x1   :  { %s960_s14 = smov 0  }
   0x2 LB: > { %s25_s15 = sadd.s32 1, %s928_s13  ;;  %p707_p0 = scmp.ge.s32.totalorder %s932_s14, 1  ;;  %s932_s14 = sphi %s960_s14, %s13_s14   ;;  %s928_s13 = sphi %s958_s13, %s1074_s13   ;;  %s924_s12 = sphi %s956_s12, %s1073_s12  }
   0x3   : > { %p27_p1 = scmp.ge.s32.totalorder %s25_s15, 2  ;;  %p156_p2 = scmp.lt.s32.totalorder %s932_s14, 3 }
   0x5   : > { %s1076_s15 = smov (%p27_p1, %s25_s15), 0  ;;  %p157_p3 = pnand %p707_p0, %p156_p2 }
   0x6   : > { %v234_v0 = vld [vmem:[%s1070_s1] sm:$0xf] (!%p157_p3)  ;;  %vm371_vm0 = vcmask (!%p157_p3), 1043456   ;;  %p183_p4 = scmp.lt.s32.totalorder (!%p157_p3), %s924_s12, 1  ;;  %vm322_vm1 = vcmask (!%p157_p3), 64512   ;;  %v934_v18 = vmov (!%p157_p3), 1.0  }
   0x7   : > { %160 = sbr.rel (%p157_p3) target bundleno = 491 (0x1eb), region = 32  ;;  %866 = vmatprep.subr.msk.bf16.mxu0 (!%p157_p3), %vm371_vm0, %v234_v0  ;;  %867 = vmatprep.subr.msk.bf16.mxu1 (!%p157_p3), %vm371_vm0, %v234_v0  ;;  %v373_v1 = vsel (!%p157_p3), %vm371_vm0, %v234_v0, 0  ;;  %v1021_v19 = vld [vmem:[%s1071_s2] ss:$0 sm:$0xff] (!%p157_p3)  ;;  %vm200_vm2 = vcmask (!%p157_p3), 122880  }
   0x8   : > { %799 = vmatpush3.bf16.msra.mxu0 (!%p157_p3), %v373_v1  ;;  %865 = vmatpush3.bf16.msra.mxu1 (!%p157_p3), %v373_v1 }
   0xe   : > { %s1078_s12 = smov (!%p183_p4, %s924_s12), 1 }
   0xf   : > { %s745_s18 = sshll.u32 %s1078_s12, 7  ;;  %s194_s26 = scalar_lea.vmem %s1072_s3, %s1078_s12 }
  0x10   : > { %s983_s21 = scalar_lea.vmem %s1069_s0, %s745_s18 }
  0x11   : > { %v894_v2 = vld [vmem:[%s983_s21] sm:$0xff]   ;;  %v896_v4 = vld [vmem:[%s983_s21 + $0x8] sm:$0xff]   ;;  %v898_v6 = vld [vmem:[%s983_s21 + $0x10] sm:$0xff]  }
  0x12   : > { %v895_v3 = vld [vmem:[%s983_s21 + $0x40] sm:$0xff]   ;;  %800 = vmatprep.mubr.msk.bf16.mxu0 %vm322_vm1, %v894_v2  ;;  %v897_v5 = vld [vmem:[%s983_s21 + $0x48] sm:$0xff]   ;;  %v899_v7 = vld [vmem:[%s983_s21 + $0x50] sm:$0xff]  }
  0x13   : > { %816 = vmatprep.mubr.msk.bf16.mxu1 %vm322_vm1, %v895_v3  ;;  %801 = vmatmul.mubr.msk.bf16.vlgmr.msra.gmra.mrb[0].mxu0 %vm322_vm1, %v896_v4  ;;  %v900_v8 = vld [vmem:[%s983_s21 + $0x18] sm:$0xff]   ;;  %v902_v10 = vld [vmem:[%s983_s21 + $0x20] sm:$0xff]   ;;  %v904_v12 = vld [vmem:[%s983_s21 + $0x28] sm:$0xff]  }
  0x14   : > { %817 = vmatmul.mubr.msk.bf16.vlgmr.msra.gmra.mrb[0].mxu1 %vm322_vm1, %v897_v5  ;;  %804 = vmatprep.mubr.msk.bf16.mxu0 %vm322_vm1, %v898_v6  ;;  %v901_v9 = vld [vmem:[%s983_s21 + $0x58] sm:$0xff]   ;;  %v903_v11 = vld [vmem:[%s983_s21 + $0x60] sm:$0xff]   ;;  %v905_v13 = vld [vmem:[%s983_s21 + $0x68] sm:$0xff]  }
  0x15   : > { %820 = vmatprep.mubr.msk.bf16.mxu1 %vm322_vm1, %v899_v7  ;;  %v906_v14 = vld [vmem:[%s983_s21 + $0x30] sm:$0xff]   ;;  %v908_v16 = vld [vmem:[%s983_s21 + $0x38] sm:$0xff]  }
  0x16   : > { %v907_v15 = vld [vmem:[%s983_s21 + $0x70] sm:$0xff]   ;;  %v909_v17 = vld [vmem:[%s983_s21 + $0x78] sm:$0xff]  }
  0x1b   : > { %805 = vmatmul.mubr.msk.bf16.gmra.mrb[4].mxu0 %vm322_vm1, %v900_v8 }
  0x1c   : > { %821 = vmatmul.mubr.msk.bf16.gmra.mrb[4].mxu1 %vm322_vm1, %v901_v9  ;;  %808 = vmatprep.mubr.msk.bf16.mxu0 %vm322_vm1, %v902_v10 }
  0x1d   : > { %824 = vmatprep.mubr.msk.bf16.mxu1 %vm322_vm1, %v903_v11 }
  0x23   : > { %809 = vmatmul.mubr.msk.bf16.gmra.mrb[8].mxu0 %vm322_vm1, %v904_v12 }
  0x24   : > { %825 = vmatmul.mubr.msk.bf16.gmra.mrb[8].mxu1 %vm322_vm1, %v905_v13  ;;  %812 = vmatprep.mubr.msk.bf16.mxu0 %vm322_vm1, %v906_v14 }
  0x25   : > { %828 = vmatprep.mubr.msk.bf16.mxu1 %vm322_vm1, %v907_v15 }
  0x2b   : > { %813 = vmatmul.mubr.msk.bf16.gmra.mrb[12].mxu0 %vm322_vm1, %v908_v16 }
  0x2c   : > { %829 = vmatmul.mubr.msk.bf16.gmra.mrb[12].mxu1 %vm322_vm1, %v909_v17 }
  0x2d   : > { %633 = vmatprep.mubr.f32.mxu1 %v934_v18 }
  0xe6   : > { %v802_v20 = vpop.f32.mrb[0].mxu0 }
  0xe7   : > { %v418_v21 = vadd.f32 %v802_v20, %v1021_v19  ;;  %v818_v22 = vpop.f32.mrb[0].mxu1  ;;  %v409_v23 = vpop.f32.mrb[1].mxu0 }
  0xe8   : > { %v482_v24 = vadd.f32 %v818_v22, %v1021_v19  ;;  %v410_v25 = vadd.f32 %v1021_v19, %v409_v23  ;;  %v473_v26 = vpop.f32.mrb[1].mxu1  ;;  %v803_v27 = vpop.f32.mrb[2].mxu0 }
  0xe9   : > { %v538_v28 = vmax.f32 %v418_v21, 0.0  ;;  %v474_v29 = vadd.f32 %v1021_v19, %v473_v26  ;;  %v421_v30 = vadd.f32 %v803_v27, %v1021_v19  ;;  %v819_v31 = vpop.f32.mrb[2].mxu1  ;;  %v412_v32 = vpop.f32.mrb[3].mxu0 }
  0xea   : > { %v485_v33 = vadd.f32 %v819_v31, %v1021_v19  ;;  %v413_v34 = vadd.f32 %v1021_v19, %v412_v32  ;;  %v476_v35 = vpop.f32.mrb[3].mxu1  ;;  %v554_v38 = vmax.f32 %v482_v24, 0.0  ;;  %v536_v39 = vmax.f32 %v410_v25, 0.0 }
  0xeb   : > { %v539_v36 = vmax.f32 %v421_v30, 0.0  ;;  %v477_v37 = vadd.f32 %v1021_v19, %v476_v35  ;;  %v552_v42 = vmax.f32 %v474_v29, 0.0 }
  0xec   : > { %v555_v40 = vmax.f32 %v485_v33, 0.0  ;;  %v537_v41 = vmax.f32 %v413_v34, 0.0 }
  0xed   : > { %v838_v43 = vpack.c.bf16 %v539_v36, %v538_v28  ;;  %v553_v44 = vmax.f32 %v477_v37, 0.0 }
  0xee   : > { %v836_v45 = vpack.c.bf16 %v555_v40, %v554_v38  ;;  %v834_v46 = vpack.c.bf16 %v537_v41, %v536_v39  ;;  %v806_v47 = vpop.f32.mrb[4].mxu0 }
  0xef   : > { %v832_v48 = vpack.c.bf16 %v553_v44, %v552_v42  ;;  %v434_v49 = vadd.f32 %v806_v47, %v1021_v19  ;;  %v822_v50 = vpop.f32.mrb[4].mxu1  ;;  %v425_v51 = vpop.f32.mrb[5].mxu0 }
  0xf0   : > { %v498_v52 = vadd.f32 %v822_v50, %v1021_v19  ;;  %v426_v53 = vadd.f32 %v1021_v19, %v425_v51  ;;  %v489_v54 = vpop.f32.mrb[5].mxu1  ;;  %v807_v55 = vpop.f32.mrb[6].mxu0 }
  0xf1   : > { %v542_v56 = vmax.f32 %v434_v49, 0.0  ;;  %v490_v57 = vadd.f32 %v1021_v19, %v489_v54  ;;  %v437_v58 = vadd.f32 %v807_v55, %v1021_v19  ;;  %v823_v59 = vpop.f32.mrb[6].mxu1  ;;  %833 = vmatprep.subr.bf16.mxu1 %v832_v48  ;;  %v428_v60 = vpop.f32.mrb[7].mxu0 }
  0xf2   : > { %v501_v61 = vadd.f32 %v823_v59, %v1021_v19  ;;  %v429_v62 = vadd.f32 %v1021_v19, %v428_v60  ;;  %v492_v63 = vpop.f32.mrb[7].mxu1  ;;  %835 = vmatpush3.bf16.msra.mxu1 %v834_v46  ;;  %v558_v2 = vmax.f32 %v498_v52, 0.0  ;;  %v540_v3 = vmax.f32 %v426_v53, 0.0 }
  0xf3   : > { %v543_v0 = vmax.f32 %v437_v58, 0.0  ;;  %v493_v1 = vadd.f32 %v1021_v19, %v492_v63  ;;  %837 = vmatprep.subr.bf16.mxu1 %v836_v45  ;;  %v556_v6 = vmax.f32 %v490_v57, 0.0 }
  0xf4   : > { %v559_v4 = vmax.f32 %v501_v61, 0.0  ;;  %v541_v5 = vmax.f32 %v429_v62, 0.0 }
  0xf5   : > { %v846_v7 = vpack.c.bf16 %v543_v0, %v542_v56  ;;  %v557_v8 = vmax.f32 %v493_v1, 0.0 }
  0xf6   : > { %v844_v9 = vpack.c.bf16 %v559_v4, %v558_v2  ;;  %v842_v10 = vpack.c.bf16 %v541_v5, %v540_v3  ;;  %839 = vmatpush3.bf16.msra.mxu1 %v838_v43  ;;  %v810_v11 = vpop.f32.mrb[8].mxu0 }
  0xf7   : > { %v840_v12 = vpack.c.bf16 %v557_v8, %v556_v6  ;;  %v450_v13 = vadd.f32 %v810_v11, %v1021_v19  ;;  %v826_v14 = vpop.f32.mrb[8].mxu1  ;;  %v441_v15 = vpop.f32.mrb[9].mxu0 }
  0xf8   : > { %v514_v16 = vadd.f32 %v826_v14, %v1021_v19  ;;  %v442_v17 = vadd.f32 %v1021_v19, %v441_v15  ;;  %v505_v20 = vpop.f32.mrb[9].mxu1  ;;  %v811_v21 = vpop.f32.mrb[10].mxu0 }
  0xf9   : > { %v546_v22 = vmax.f32 %v450_v13, 0.0  ;;  %v506_v23 = vadd.f32 %v1021_v19, %v505_v20  ;;  %v453_v24 = vadd.f32 %v811_v21, %v1021_v19  ;;  %v827_v25 = vpop.f32.mrb[10].mxu1  ;;  %841 = vmatprep.subr.bf16.mxu1 %v840_v12  ;;  %v444_v26 = vpop.f32.mrb[11].mxu0 }
  0xfa   : > { %v517_v27 = vadd.f32 %v827_v25, %v1021_v19  ;;  %v445_v28 = vadd.f32 %v1021_v19, %v444_v26  ;;  %v508_v29 = vpop.f32.mrb[11].mxu1  ;;  %843 = vmatpush3.bf16.msra.mxu1 %v842_v10  ;;  %v562_v32 = vmax.f32 %v514_v16, 0.0  ;;  %v544_v33 = vmax.f32 %v442_v17, 0.0 }
  0xfb   : > { %v547_v30 = vmax.f32 %v453_v24, 0.0  ;;  %v509_v31 = vadd.f32 %v1021_v19, %v508_v29  ;;  %845 = vmatprep.subr.bf16.mxu1 %v844_v9  ;;  %v560_v36 = vmax.f32 %v506_v23, 0.0 }
  0xfc   : > { %v563_v34 = vmax.f32 %v517_v27, 0.0  ;;  %v545_v35 = vmax.f32 %v445_v28, 0.0 }
  0xfd   : > { %v854_v37 = vpack.c.bf16 %v547_v30, %v546_v22  ;;  %v561_v38 = vmax.f32 %v509_v31, 0.0 }
  0xfe   : > { %v852_v39 = vpack.c.bf16 %v563_v34, %v562_v32  ;;  %v850_v40 = vpack.c.bf16 %v545_v35, %v544_v33  ;;  %847 = vmatpush3.bf16.msra.mxu1 %v846_v7  ;;  %v814_v41 = vpop.f32.mrb[12].mxu0 }
  0xff   : > { %v848_v42 = vpack.c.bf16 %v561_v38, %v560_v36  ;;  %v466_v43 = vadd.f32 %v814_v41, %v1021_v19  ;;  %v830_v44 = vpop.f32.mrb[12].mxu1  ;;  %v457_v45 = vpop.f32.mrb[13].mxu0 }
 0x100   : > { %v530_v46 = vadd.f32 %v830_v44, %v1021_v19  ;;  %v458_v47 = vadd.f32 %v1021_v19, %v457_v45  ;;  %v521_v48 = vpop.f32.mrb[13].mxu1  ;;  %v815_v49 = vpop.f32.mrb[14].mxu0 }
 0x101   : > { %v550_v50 = vmax.f32 %v466_v43, 0.0  ;;  %v522_v51 = vadd.f32 %v1021_v19, %v521_v48  ;;  %v469_v52 = vadd.f32 %v815_v49, %v1021_v19  ;;  %v831_v53 = vpop.f32.mrb[14].mxu1  ;;  %849 = vmatprep.subr.bf16.mxu1 %v848_v42  ;;  %v460_v54 = vpop.f32.mrb[15].mxu0 }
 0x102   : > { %v533_v55 = vadd.f32 %v831_v53, %v1021_v19  ;;  %v461_v56 = vadd.f32 %v1021_v19, %v460_v54  ;;  %v524_v57 = vpop.f32.mrb[15].mxu1  ;;  %851 = vmatpush3.bf16.msra.mxu1 %v850_v40  ;;  %v566_v60 = vmax.f32 %v530_v46, 0.0  ;;  %v548_v61 = vmax.f32 %v458_v47, 0.0 }
 0x103   : > { %v551_v58 = vmax.f32 %v469_v52, 0.0  ;;  %v525_v59 = vadd.f32 %v1021_v19, %v524_v57  ;;  %853 = vmatprep.subr.bf16.mxu1 %v852_v39  ;;  %v564_v0 = vmax.f32 %v522_v51, 0.0  ;;  %v935_v19 = vmov 0.0  }
 0x104   : > { %v567_v62 = vmax.f32 %v533_v55, 0.0  ;;  %v549_v63 = vmax.f32 %v461_v56, 0.0  ;;  %201 = vst.msk [vmem:[%s194_s26] sm:$0x1] %vm200_vm2, %v935_v19 }
 0x105   : > { %v862_v1 = vpack.c.bf16 %v551_v58, %v550_v50  ;;  %v565_v2 = vmax.f32 %v525_v59, 0.0 }
 0x106   : > { %v860_v3 = vpack.c.bf16 %v567_v62, %v566_v60  ;;  %v858_v4 = vpack.c.bf16 %v549_v63, %v548_v61  ;;  %855 = vmatpush3.bf16.msra.mxu1 %v854_v37 }
 0x107   : > { %v856_v5 = vpack.c.bf16 %v565_v2, %v564_v0 }
 0x109   : > { %857 = vmatprep.subr.bf16.mxu1 %v856_v5 }
 0x10a   : > { %859 = vmatpush3.bf16.msra.mxu1 %v858_v4 }
 0x10b   : > { %861 = vmatprep.subr.bf16.mxu1 %v860_v3  ;;  %v568_v7 = vld [vmem:[%s194_s26] sm:$0x1] }
 0x10e   : > { %863 = vmatpush3.bf16.msra.mxu1 %v862_v1 }
 0x111   : > { %634 = vmatmul.mubr.f32.vlgmr.msra.gmra.mrb[16].mxu1 %v934_v18 }
 0x1e4   : > { %v795_v6 = vpop.f32.mrb[16].mxu1 }
 0x1e5   : > { %v796_v8 = vpop.f32.mrb[17].mxu1 }
 0x1e6   : > { %v797_v9 = vadd.f32 %v796_v8, %v795_v6 }
 0x1e8   : > { %v639_v10 = vadd.f32 %v797_v9, %v568_v7 }
 0x1ea   : > { %641 = vst.msk [vmem:[%s194_s26] sm:$0x1] %vm200_vm2, %v639_v10 }
 0x1eb PF: > { %s13_s14 = sadd.s32 1, %s932_s14   ;;  %s1073_s12 = smov %s928_s13 }
 0x1ec   : > { %p10_p5 = scmp.ge.s32.totalorder %s13_s14, 4   ;;  %s1074_s13 = smov %s1076_s15 }
 0x1ee   :  { %12 = sbr.rel (!%p10_p5) target bundleno = 2 (0x2), region = 66 }

// kernel: _forward.9
= control target key start
LH: loop header
LB: loop body
LE: loop exit
PB: predicated region body
PF: predicated region fallthrough
CT: control target
= control target key end

     0   :  { %vm18_vm0 = vcmask 123904   ;;  %v167_v2 = vmov 0.0|0.0   ;;  %vm168_vm1 = vmmov 0   ;;  %v169_v4 = vmov 0.0   ;;  %s221_s0 = inlined_call_operand.vmem [shape: f32[3,2,16], index: 0, kind: input, shape index: {}]   ;;  %s222_s1 = inlined_call_operand.vmem [shape: f32[16,10], index: 1, kind: input, shape index: {}]   ;;  %s223_s2 = inlined_call_operand.vmem [shape: f32[1,10], index: 2, kind: input, shape index: {}]   ;;  %s224_s3 = inlined_call_operand.hbm [shape: f32[2,10], index: 3, kind: output, shape index: {}]  }
   0x1   :  { %v25_v0 = vld [vmem:[%s222_s1] sm:$0xff]  ;;  %v26_v1 = vld [vmem:[%s222_s1 + $0x8] sm:$0xff]  ;;  %136 = vmatprep.subr.bf16.mxu0 %v167_v2  ;;  %133 = vmatprep.mubr.msk.f32.mxu0 %vm168_vm1, %v169_v4 }
   0x2   :  { %v137_v3 = vpack.c.bf16 %v26_v1, %v25_v0  ;;  %v15_v5 = vld [vmem:[%s221_s0] sm:$0x3]  ;;  %v16_v6 = vld [vmem:[%s221_s0 + $0x2] sm:$0x3]  ;;  %v17_v7 = vld [vmem:[%s221_s0 + $0x4] sm:$0x3] }
   0x3   :  { %v19_v8 = vsel %vm18_vm0, %v15_v5, 0.0  ;;  %v20_v9 = vsel %vm18_vm0, %v16_v6, 0.0  ;;  %v22_v10 = vsel %vm18_vm0, %v17_v7, 0.0 }
   0x4   :  { %138 = vmatpush3.bf16.msra.mxu0 %v137_v3  ;;  %v21_v11 = vadd.f32 %v20_v9, %v19_v8 }
   0x5   :  { %8 = vsyncpa [#allocation3], 0  ;;  %vm34_vm2 = vcmask 130048   ;;  %v124_v14 = vld [vmem:[%s223_s2] ss:$0 sm:$0xff]  ;;  %s170_s23 = smov [#allocation2]  }
   0x6   :  { %v23_v12 = vadd.f32 %v22_v10, %v21_v11  ;;  %s116_s24 = sshll.u32 %s170_s23, 4  ;;  %vm108_vm3 = vcmask 74752   ;;  %s117_s24 = int_to_ptr.vmem [resolvable:$true] %s116_s24 }
   0x7   :  { %s143_s0 = scalar_lea.vmem %s117_s24, 32  ;;  %p148_p1 = scmp.lt.s32.totalorder %s117_s24, %s117_s24 }
   0x8   :  { %v24_v13 = vmul.f32 0.00390625, %v23_v12  ;;  %p144_p0 = scmp.ne.s32.totalorder %s117_s24, %s143_s0  ;;  %p149_p2 = scmp.lt.s32.totalorder %s143_s0, %s143_s0 }
   0xa   :  { %134 = vmatmul.mubr.msk.f32.vlgmr.msra.gmra.mrb[0].mxu0 %vm34_vm2, %v24_v13  ;;  %p150_p3 = por %p149_p2, %p148_p1 }
   0xc   :  { %p151_p4 = pnand %p150_p3, %p144_p0 }
  0xdd   :  { %v104_v15 = vpop.f32.mrb[0].mxu0 }
  0xde   :  { %v105_v16 = vadd.f32 %v124_v14, %v104_v15  ;;  %v135_v17 = vpop.f32.mrb[1].mxu0 }
  0xe0   :  { %109 = vst.msk [vmem:[#allocation2] sm:$0x3] %vm108_vm3, %v105_v16 }
  0xe1   :  { %154 = shalt.err (!%p151_p4)
}
  0xe2   :  { %s155_s27 = scalar_lea.hbm %s224_s3, 32 }
  0xe3   :  { %p156_p5 = scmp.ne.s32.totalorder %s224_s3, %s155_s27  ;;  %p159_p6 = scmp.lt.u32.totalorder %s155_s27, %s224_s3 }
  0xe5   :  { %p161_p7 = pnand %p159_p6, %p156_p5 }
  0xe7   :  { %164 = shalt.err (!%p161_p7)
}
  0xe8   :  { %119 = dma.vmem_to_hbm [thread:$0]  %s117_s24, 32, %s224_s3, [#allocation3]  }
  0xe9   :  { %165 = dma.done.wait [#allocation3], 32  }
  0xea   :  { %166 = vsyncadd [#allocation3], 4294967264 }
  0xeb   :  { %123 = vsyncpa [#allocation3], 1 }

</bundles_post_ra>
